<compile_context>
chip_gen: v6e
topology: v6e:2x2x1
jax: 0.10.0
libtpu: 0.0.40
codegen_flags: <defaults>
</compile_context>

<pallas_src>
import jax
import jax.numpy as jnp
from jax import lax
from jax.experimental import pallas as pl
from jax.experimental.pallas import tpu as pltpu

# ---- config (mirrors RelationExtractor.__init__ for model='ComplEx') ----
B = 2              # real batch
BP = 8             # batch padded to one full sublane tile
T = 8              # max question length (seq)
VOCAB = 32         # vocab_size
E_DIM = 16         # embedding_dim (word embeddings)
HID = 32           # hidden_dim  (bi-LSTM -> 2*HID features)
REL_BASE = 32      # relation_dim constructor arg
MULT = 2           # ComplEx multiplier
REL_DIM = REL_BASE * MULT   # self.relation_dim == pretrained entity embedding dim
N_ENT = 128        # num_entities
MID1 = 256
MID2 = 256
LS = 0.1           # label smoothing
BN_EPS = 1e-5


# ------------------------------------------------------------------
# Fused kernel: gathers + bi-LSTM + tf-idf sum + MLP + ComplEx + BCE loss
# ------------------------------------------------------------------
def _fused_kernel(sent2_ref, phead_ref, ptail_ref, lens_ref, tfidf_ref,
                  pinf_ref, pinb_ref, bin_ref, whh_ref,
                  w1_ref, w2_ref, w3_ref, b3_ref, entt_ref,
                  bn0s_ref, bn0b_ref, bn2s_ref, bn2b_ref,
                  loss_ref, gx_ref):
    # sent2_ref: [T*BP, 2] int32 (col0 = token at time t, col1 = token at T-1-t)
    # phead_ref: [BP, 1] int32    ptail_ref: [BP, N]   lens_ref: [BP, 1] int32
    # tfidf_ref: [BP, T] f32
    # pinf/pinb: [V, 8H] bf16  (word_emb @ W_ih folded, gate-reordered, placed per dir)
    # bin_ref:   [1, 8H] f32   whh_ref: [2H, 8H] bf16 (block-diagonal, gate-reordered)
    # w1: [2H, MID1] bf16   w2: [MID1, MID2] bf16   w3: [MID2, 2D] bf16   b3: [1, 2D] f32
    # entt_ref:  [2D, N] bf16 (transposed entity table)   bn*: [1, 2D] f32
    # gx_ref (scratch): [T*BP, 8H] f32 precomputed input-projection gates
    f32 = jnp.float32
    bf16 = jnp.bfloat16
    H = HID
    Tn, V, N = T, VOCAB, N_ENT
    TB = Tn * BP
    RD = REL_DIM
    D = RD // 2

    # ---- setup: word-embedding gather folded into the LSTM input projection.
    #      One one-hot matmul per direction; the backward one already consumes
    #      the time-reversed token ids, so gx row-block s holds fwd gates for
    #      time s and bwd gates for time T-1-s in the packed [i|f|o|g] layout.
    ids = sent2_ref[...]                                               # [T*BP, 2]
    iota_v = lax.broadcasted_iota(jnp.int32, (TB, V), 1)
    # bool -> f32 -> bf16 (two converts; both guaranteed to lower)
    oh_f = (ids[:, 0:1] == iota_v).astype(f32).astype(bf16)            # [T*BP, V]
    oh_r = (ids[:, 1:2] == iota_v).astype(f32).astype(bf16)
    gx_ref[...] = (jnp.dot(oh_f, pinf_ref[...], preferred_element_type=f32)
                   + jnp.dot(oh_r, pinb_ref[...], preferred_element_type=f32)
                   + bin_ref[...])                                     # [T*BP, 8H]

    lens = lens_ref[...]                                               # [BP, 1] int32
    # length-masked tf-idf weights, hoisted out of the recurrence
    wmask = tfidf_ref[...] * (
        lax.broadcasted_iota(jnp.int32, (BP, Tn), 1) < lens).astype(f32)   # [BP, T]
    is_fwd = lax.broadcasted_iota(jnp.int32, (BP, 2 * H), 1) < H           # [BP, 2H]

    whh = whh_ref[...]                                                 # [2H, 8H] bf16 (load once)

    zeros = jnp.zeros((BP, 2 * H), f32)
    h = zeros        # packed [hf | hb]
    c = zeros
    acc = zeros      # packed tf-idf weighted sum [accf | accb]

    # ---- fully-unrolled bidirectional recurrence: ONE block-diagonal MXU dot
    #      and 3 transcendental pushes per step on the serial chain ----
    for s in range(Tn):
        tb = Tn - 1 - s
        gates = (gx_ref[s * BP:(s + 1) * BP, :]                        # aligned [BP, 8H] tile
                 + jnp.dot(h.astype(bf16), whh, preferred_element_type=f32))
        # gate layout: [i(2H) | f(2H) | o(2H) | g(2H)], each half = [fwd | bwd]
        sig = jax.nn.sigmoid(gates[:, 0:6 * H])
        g = jnp.tanh(gates[:, 6 * H:8 * H])
        i_g = sig[:, 0:2 * H]
        f_g = sig[:, 2 * H:4 * H]
        o_g = sig[:, 4 * H:6 * H]
        c_new = f_g * c + i_g * g
        h_new = o_g * jnp.tanh(c_new)

        # fwd weight uses time s, bwd weight uses time tb; both length-masked.
        w_step = jnp.where(is_fwd, wmask[:, s:s + 1], wmask[:, tb:tb + 1])
        acc = acc + h_new * w_step

        # forward lanes always update (trailing padding is weight-masked);
        # backward lanes freeze until tb < len (packed-sequence semantics).
        upd = jnp.logical_or(is_fwd, lens > tb)
        h = jnp.where(upd, h_new, h)
        c = jnp.where(upd, c_new, c)

    # ---- applyNonLinear: lin1 -> relu -> lin2 -> relu -> hidden2rel ----
    h1 = jnp.maximum(jnp.dot(acc.astype(bf16), w1_ref[...],
                             preferred_element_type=f32), 0.0)
    h2 = jnp.maximum(jnp.dot(h1.astype(bf16), w2_ref[...],
                             preferred_element_type=f32), 0.0)
    rel = jnp.dot(h2.astype(bf16), w3_ref[...],
                  preferred_element_type=f32) + b3_ref[...]            # [BP, 2D]

    # ---- head-entity gather: one-hot A @ ent_t^T contraction (no duplicate table) ----
    oh_h = (phead_ref[...] ==
            lax.broadcasted_iota(jnp.int32, (BP, N), 1)).astype(f32).astype(bf16)
    head = lax.dot_general(oh_h, entt_ref[...],
                           dimension_numbers=(((1,), (1,)), ((), ())),
                           preferred_element_type=f32)                 # [BP, 2D]

    # ---- ComplEx scoring (eval-mode BatchNorm1d(2) fused into scale/shift) ----
    h_bn = head * bn0s_ref[...] + bn0b_ref[...]
    r_roll = pltpu.roll(rel, shift=D, axis=1)                          # [im_r | re_r]
    h_roll = pltpu.roll(h_bn, shift=D, axis=1)                         # [im_h | re_h]
    first = lax.broadcasted_iota(jnp.int32, (BP, RD), 1) < D
    a_vec = jnp.where(first, rel, r_roll)                              # [ re_r | re_r]
    b_vec = jnp.where(first, -r_roll, rel)                             # [-im_r | im_r]
    s_pre = h_bn * a_vec + h_roll * b_vec                              # [ re_s | im_s]
    s_bn = s_pre * bn2s_ref[...] + bn2b_ref[...]
    # score = re_s @ re_tail.T + im_s @ im_tail.T (one dot against ent_t)
    score = jnp.dot(s_bn.astype(bf16), entt_ref[...],
                    preferred_element_type=f32)                        # [BP, N]

    # ---- label-smoothed BCE(sum) on sigmoid(score), stable form; padded rows masked ----
    actual = (1.0 - LS) * ptail_ref[...] + 1.0 / N
    bce = (jnp.maximum(score, 0.0)
           + jnp.log1p(jnp.exp(-jnp.abs(score)))
           - actual * score)
    row_ok = (lax.broadcasted_iota(jnp.int32, (BP, N), 0) < B).astype(f32)
    loss_ref[0, 0] = jnp.sum(bce * row_ok)


# ------------------------------------------------------------------
# Wrapper (single pallas_call; only layout prep / batch padding stays in XLA glue)
# ------------------------------------------------------------------
_VMEM = pl.BlockSpec(memory_space=pltpu.MemorySpace.VMEM)
_SMEM = pl.BlockSpec(memory_space=pltpu.MemorySpace.SMEM)


@jax.jit
def relation_extractor_forward(p, sentence, p_head, p_tail, question_len,
                               q_value_tfidf):
    pad_b = BP - B
    sent_p = jnp.pad(sentence.astype(jnp.int32), ((0, pad_b), (0, 0)))     # [BP, T]
    sent_tm = jnp.transpose(sent_p)                                        # [T, BP] time-major
    sent_rev = sent_tm[::-1]                                               # time-reversed
    sent2 = jnp.stack([sent_tm, sent_rev], axis=-1).reshape(T * BP, 2)
    phead2 = jnp.pad(p_head.astype(jnp.int32), (0, pad_b)).reshape(BP, 1)
    ptail2 = jnp.pad(p_tail.astype(jnp.float32), ((0, pad_b), (0, 0)))
    lens2 = jnp.pad(question_len.astype(jnp.int32), (0, pad_b)).reshape(BP, 1)
    tfidf2 = jnp.pad(q_value_tfidf.reshape(B, T).astype(jnp.float32),
                     ((0, pad_b), (0, 0)))

    out = pl.pallas_call(
        _fused_kernel,
        out_shape=jax.ShapeDtypeStruct((1, 1), jnp.float32),
        in_specs=[_VMEM] * 18,
        out_specs=_SMEM,
        scratch_shapes=[pltpu.VMEM((T * BP, 8 * HID), jnp.float32)],
    )(sent2, phead2, ptail2, lens2, tfidf2,
      p['p_in_f'], p['p_in_b'], p['b_in'], p['whh'],
      p['w1'], p['w2'], p['w3'], p['b3'], p['ent_t'],
      p['bn0_scale'], p['bn0_shift'], p['bn2_scale'], p['bn2_shift'])
    return out[0, 0]


# ------------------------------------------------------------------
# Deterministic parameter init (shapes from RelationExtractor.__init__).
# All per-call-invariant prep is done once here: word-embedding table folded
# into the input projection, gate-column reorder to [i|f|o|g] packed across
# directions, block-diagonal recurrent weight, entity transpose, BN fusion,
# bf16 cast of the MXU operands.
# ------------------------------------------------------------------
def init_params(key):
    ks = jax.random.split(key, 16)
    H = HID

    def nrm(k, shape, scale=0.1):
        return (scale * jax.random.normal(k, shape)).astype(jnp.float32)

    wemb = nrm(ks[0], (VOCAB, E_DIM))            # nn.Embedding(vocab, emb)
    ent = nrm(ks[1], (N_ENT, REL_DIM))           # pretrained entity embeddings

    # nn.LSTM (bidirectional, 1 layer); weights stored transposed for x @ W,
    # biases b_ih + b_hh combined.  PyTorch gate column order is (i, f, g, o).
    wih_f = nrm(ks[2], (E_DIM, 4 * H))
    whh_f = nrm(ks[3], (H, 4 * H))
    b_f = nrm(ks[4], (1, 4 * H))
    wih_b = nrm(ks[5], (E_DIM, 4 * H))
    whh_b = nrm(ks[6], (H, 4 * H))
    b_b = nrm(ks[7], (1, 4 * H))

    def place(m4h, fwd):
        # [*, 4H] (PyTorch order i,f,g,o) -> [*, 8H] in the kernel's layout
        # [i_f, i_b, f_f, f_b, o_f, o_b, g_f, g_b] with the other direction zeroed.
        i, f, g, o = (m4h[..., 0:H], m4h[..., H:2 * H],
                      m4h[..., 2 * H:3 * H], m4h[..., 3 * H:4 * H])
        z = jnp.zeros_like(i)
        parts = [i, z, f, z, o, z, g, z] if fwd else [z, i, z, f, z, o, z, g]
        return jnp.concatenate(parts, axis=-1)

    p = {}
    # Word-embedding table folded into the input projection (exact for one-hot
    # gathers): gx_row = wemb[token] @ W_ih + b.  Backward uses reversed-time ids.
    p['p_in_f'] = place(wemb @ wih_f, True).astype(jnp.bfloat16)       # [V, 8H]
    p['p_in_b'] = place(wemb @ wih_b, False).astype(jnp.bfloat16)      # [V, 8H]
    p['b_in'] = (place(b_f, True) + place(b_b, False)).astype(jnp.float32)  # [1, 8H]
    # Block-diagonal recurrent weight: rows 0:H act on hf, rows H:2H on hb.
    p['whh'] = jnp.concatenate([place(whh_f, True), place(whh_b, False)],
                               axis=0).astype(jnp.bfloat16)            # [2H, 8H]

    # applyNonLinear: lin1 (no bias), lin2 (no bias), hidden2rel.
    p['w1'] = nrm(ks[8], (2 * H, MID1)).astype(jnp.bfloat16)
    p['w2'] = nrm(ks[9], (MID1, MID2)).astype(jnp.bfloat16)
    p['w3'] = nrm(ks[10], (MID2, REL_DIM)).astype(jnp.bfloat16)
    p['b3'] = nrm(ks[11], (1, REL_DIM))

    # Single transposed entity table serves both the head gather and scoring.
    p['ent_t'] = jnp.transpose(ent).astype(jnp.bfloat16)               # [2D, N]

    # BatchNorm1d(2) for ComplEx (bn0 / bn2), eval mode -> fused per-channel
    # scale/shift, broadcast to full-width [1, 2D] lane vectors
    # (channel 0 -> real half, channel 1 -> imaginary half).
    bn0_w = jnp.ones((2,), jnp.float32)
    bn0_b = jnp.zeros((2,), jnp.float32)
    bn0_rm = 0.05 * jax.random.normal(ks[12], (2,), jnp.float32)
    bn0_rv = 1.0 + 0.1 * jax.random.uniform(ks[13], (2,), jnp.float32)
    bn2_w = jnp.ones((2,), jnp.float32)
    bn2_b = jnp.zeros((2,), jnp.float32)
    bn2_rm = 0.05 * jax.random.normal(ks[14], (2,), jnp.float32)
    bn2_rv = 1.0 + 0.1 * jax.random.uniform(ks[15], (2,), jnp.float32)

    D = REL_DIM // 2

    def fuse(w, b, rm, rv):
        sc = w / jnp.sqrt(rv + BN_EPS)
        sh = b - rm * sc
        scale_vec = jnp.repeat(sc, D).reshape(1, REL_DIM).astype(jnp.float32)
        shift_vec = jnp.repeat(sh, D).reshape(1, REL_DIM).astype(jnp.float32)
        return scale_vec, shift_vec

    p['bn0_scale'], p['bn0_shift'] = fuse(bn0_w, bn0_b, bn0_rm, bn0_rv)
    p['bn2_scale'], p['bn2_shift'] = fuse(bn2_w, bn2_b, bn2_rm, bn2_rv)
    return p


if __name__ == "__main__":
    key = jax.random.PRNGKey(0)
    k_param, k_sent, k_head, k_tail, k_tfidf = jax.random.split(key, 5)

    params = init_params(k_param)

    sentence = jax.random.randint(k_sent, (B, T), 0, VOCAB, dtype=jnp.int32)
    p_head = jax.random.randint(k_head, (B,), 0, N_ENT, dtype=jnp.int32)
    p_tail = jax.random.bernoulli(k_tail, 0.05, (B, N_ENT)).astype(jnp.float32)
    # pack_padded_sequence(enforce_sorted=True) requires descending lengths.
    question_len = jnp.array([T, 5], dtype=jnp.int32)
    q_value_tfidf = jax.random.uniform(k_tfidf, (B, T, 1), dtype=jnp.float32)

    loss = relation_extractor_forward(params, sentence, p_head, p_tail,
                                      question_len, q_value_tfidf)
    jax.block_until_ready(loss)
    assert loss.shape == () and jnp.isfinite(loss)
    print("KERNEL_OK")
</pallas_src>

<mosaic_0001>
module attributes {stable_mosaic.version = 11 : i64} {
  func.func @_fused_kernel(%arg0: memref<64x2xi32, #tpu.memory_space<vmem>>, %arg1: memref<8x1xi32, #tpu.memory_space<vmem>>, %arg2: memref<8x128xf32, #tpu.memory_space<vmem>>, %arg3: memref<8x1xi32, #tpu.memory_space<vmem>>, %arg4: memref<8x8xf32, #tpu.memory_space<vmem>>, %arg5: memref<32x256xbf16, #tpu.memory_space<vmem>>, %arg6: memref<32x256xbf16, #tpu.memory_space<vmem>>, %arg7: memref<1x256xf32, #tpu.memory_space<vmem>>, %arg8: memref<64x256xbf16, #tpu.memory_space<vmem>>, %arg9: memref<64x256xbf16, #tpu.memory_space<vmem>>, %arg10: memref<256x256xbf16, #tpu.memory_space<vmem>>, %arg11: memref<256x64xbf16, #tpu.memory_space<vmem>>, %arg12: memref<1x64xf32, #tpu.memory_space<vmem>>, %arg13: memref<64x128xbf16, #tpu.memory_space<vmem>>, %arg14: memref<1x64xf32, #tpu.memory_space<vmem>>, %arg15: memref<1x64xf32, #tpu.memory_space<vmem>>, %arg16: memref<1x64xf32, #tpu.memory_space<vmem>>, %arg17: memref<1x64xf32, #tpu.memory_space<vmem>>, %arg18: memref<1x1xf32, #tpu.memory_space<smem>>, %arg19: memref<64x256xf32, #tpu.memory_space<vmem>>) attributes {dimension_semantics = [], scalar_prefetch = 0 : i64, scratch_operands = 1 : i64, tpu.core_type = #tpu.core_type<tc>} {
    %c0 = arith.constant 0 : index
    %c0_0 = arith.constant 0 : index
    %0 = vector.load %arg0[%c0, %c0_0] : memref<64x2xi32, #tpu.memory_space<vmem>>, vector<64x2xi32>
    %1 = tpu.iota {dimensions = array<i32: 1>} : vector<64x32xi32>
    %2 = vector.extract_strided_slice %0 {offsets = [0, 0], sizes = [64, 1], strides = [1, 1]} : vector<64x2xi32> to vector<64x1xi32>
    %3 = vector.broadcast %2 : vector<64x1xi32> to vector<64x32xi32>
    %4 = arith.cmpi eq, %3, %1 : vector<64x32xi32>
    %5 = arith.extui %4 : vector<64x32xi1> to vector<64x32xi32>
    %6 = arith.sitofp %5 : vector<64x32xi32> to vector<64x32xf32>
    %7 = arith.truncf %6 : vector<64x32xf32> to vector<64x32xbf16>
    %8 = vector.extract_strided_slice %0 {offsets = [0, 1], sizes = [64, 1], strides = [1, 1]} : vector<64x2xi32> to vector<64x1xi32>
    %9 = vector.broadcast %8 : vector<64x1xi32> to vector<64x32xi32>
    %10 = arith.cmpi eq, %9, %1 : vector<64x32xi32>
    %11 = arith.extui %10 : vector<64x32xi1> to vector<64x32xi32>
    %12 = arith.sitofp %11 : vector<64x32xi32> to vector<64x32xf32>
    %13 = arith.truncf %12 : vector<64x32xf32> to vector<64x32xbf16>
    %c0_1 = arith.constant 0 : index
    %c0_2 = arith.constant 0 : index
    %14 = vector.load %arg5[%c0_1, %c0_2] : memref<32x256xbf16, #tpu.memory_space<vmem>>, vector<32x256xbf16>
    %cst = arith.constant dense<0.000000e+00> : vector<64x256xf32>
    %15 = tpu.matmul %7, %14, %cst {dimension_numbers = #tpu.dot_dimension_numbers<[1], [0], [0], [1], [0, 0, 1, 1], [], []>} : vector<64x32xbf16>, vector<32x256xbf16>, vector<64x256xf32> -> vector<64x256xf32>
    %c0_3 = arith.constant 0 : index
    %c0_4 = arith.constant 0 : index
    %16 = vector.load %arg6[%c0_3, %c0_4] : memref<32x256xbf16, #tpu.memory_space<vmem>>, vector<32x256xbf16>
    %cst_5 = arith.constant dense<0.000000e+00> : vector<64x256xf32>
    %17 = tpu.matmul %13, %16, %cst_5 {dimension_numbers = #tpu.dot_dimension_numbers<[1], [0], [0], [1], [0, 0, 1, 1], [], []>} : vector<64x32xbf16>, vector<32x256xbf16>, vector<64x256xf32> -> vector<64x256xf32>
    %18 = arith.addf %15, %17 : vector<64x256xf32>
    %c0_6 = arith.constant 0 : index
    %c0_7 = arith.constant 0 : index
    %19 = vector.load %arg7[%c0_6, %c0_7] : memref<1x256xf32, #tpu.memory_space<vmem>>, vector<1x256xf32>
    %20 = vector.broadcast %19 : vector<1x256xf32> to vector<64x256xf32>
    %21 = arith.addf %18, %20 : vector<64x256xf32>
    %c0_8 = arith.constant 0 : index
    %c0_9 = arith.constant 0 : index
    %22 = vector.load %arg19[%c0_8, %c0_9] : memref<64x256xf32, #tpu.memory_space<vmem>>, vector<64x256xf32>
    tpu.vector_store %arg19[%c0_8, %c0_9], %21 {strides = array<i32>} : memref<64x256xf32, #tpu.memory_space<vmem>>, vector<64x256xf32>,
    %c0_10 = arith.constant 0 : index
    %c0_11 = arith.constant 0 : index
    %23 = vector.load %arg3[%c0_10, %c0_11] : memref<8x1xi32, #tpu.memory_space<vmem>>, vector<8x1xi32>
    %c0_12 = arith.constant 0 : index
    %c0_13 = arith.constant 0 : index
    %24 = vector.load %arg4[%c0_12, %c0_13] : memref<8x8xf32, #tpu.memory_space<vmem>>, vector<8x8xf32>
    %25 = tpu.iota {dimensions = array<i32: 1>} : vector<8x8xi32>
    %26 = vector.broadcast %23 : vector<8x1xi32> to vector<8x8xi32>
    %27 = arith.cmpi slt, %25, %26 : vector<8x8xi32>
    %28 = arith.extui %27 : vector<8x8xi1> to vector<8x8xi32>
    %29 = arith.sitofp %28 : vector<8x8xi32> to vector<8x8xf32>
    %30 = arith.mulf %24, %29 : vector<8x8xf32>
    %31 = tpu.iota {dimensions = array<i32: 1>} : vector<8x64xi32>
    %c32_i32 = arith.constant 32 : i32
    %32 = vector.broadcast %c32_i32 : i32 to vector<8x64xi32>
    %33 = arith.cmpi slt, %31, %32 : vector<8x64xi32>
    %c0_14 = arith.constant 0 : index
    %c0_15 = arith.constant 0 : index
    %34 = vector.load %arg8[%c0_14, %c0_15] : memref<64x256xbf16, #tpu.memory_space<vmem>>, vector<64x256xbf16>
    %cst_16 = arith.constant 0.000000e+00 : f32
    %35 = vector.broadcast %cst_16 : f32 to vector<8x64xf32>
    %c0_17 = arith.constant 0 : index
    %c0_18 = arith.constant 0 : index
    %36 = vector.load %arg19[%c0_17, %c0_18] : memref<64x256xf32, #tpu.memory_space<vmem>>, vector<8x256xf32>
    %37 = arith.truncf %35 : vector<8x64xf32> to vector<8x64xbf16>
    %cst_19 = arith.constant dense<0.000000e+00> : vector<8x256xf32>
    %38 = tpu.matmul %37, %34, %cst_19 {dimension_numbers = #tpu.dot_dimension_numbers<[1], [0], [0], [1], [0, 0, 1, 1], [], []>} : vector<8x64xbf16>, vector<64x256xbf16>, vector<8x256xf32> -> vector<8x256xf32>
    %39 = arith.addf %36, %38 : vector<8x256xf32>
    %40 = vector.extract_strided_slice %39 {offsets = [0, 0], sizes = [8, 192], strides = [1, 1]} : vector<8x256xf32> to vector<8x192xf32>
    %41 = arith.negf %40 : vector<8x192xf32>
    %42 = math.exp %41 : vector<8x192xf32>
    %cst_20 = arith.constant 1.000000e+00 : f32
    %43 = vector.broadcast %cst_20 : f32 to vector<8x192xf32>
    %44 = arith.addf %43, %42 : vector<8x192xf32>
    %45 = arith.divf %43, %44 : vector<8x192xf32>
    %46 = vector.extract_strided_slice %39 {offsets = [0, 192], sizes = [8, 64], strides = [1, 1]} : vector<8x256xf32> to vector<8x64xf32>
    %47 = math.tanh %46 : vector<8x64xf32>
    %48 = vector.extract_strided_slice %45 {offsets = [0, 0], sizes = [8, 64], strides = [1, 1]} : vector<8x192xf32> to vector<8x64xf32>
    %49 = vector.extract_strided_slice %45 {offsets = [0, 64], sizes = [8, 64], strides = [1, 1]} : vector<8x192xf32> to vector<8x64xf32>
    %50 = vector.extract_strided_slice %45 {offsets = [0, 128], sizes = [8, 64], strides = [1, 1]} : vector<8x192xf32> to vector<8x64xf32>
    %51 = arith.mulf %49, %35 : vector<8x64xf32>
    %52 = arith.mulf %48, %47 : vector<8x64xf32>
    %53 = arith.addf %51, %52 : vector<8x64xf32>
    %54 = math.tanh %53 : vector<8x64xf32>
    %55 = arith.mulf %50, %54 : vector<8x64xf32>
    %56 = vector.extract_strided_slice %30 {offsets = [0, 0], sizes = [8, 1], strides = [1, 1]} : vector<8x8xf32> to vector<8x1xf32>
    %57 = vector.extract_strided_slice %30 {offsets = [0, 7], sizes = [8, 1], strides = [1, 1]} : vector<8x8xf32> to vector<8x1xf32>
    %58 = vector.shape_cast %56 : vector<8x1xf32> to vector<8x1xf32>
    %59 = vector.broadcast %58 : vector<8x1xf32> to vector<8x64xf32>
    %60 = vector.shape_cast %57 : vector<8x1xf32> to vector<8x1xf32>
    %61 = vector.broadcast %60 : vector<8x1xf32> to vector<8x64xf32>
    %62 = arith.select %33, %59, %61 : vector<8x64xi1>, vector<8x64xf32>
    %63 = arith.mulf %55, %62 : vector<8x64xf32>
    %64 = arith.addf %35, %63 : vector<8x64xf32>
    %c7_i32 = arith.constant 7 : i32
    %65 = vector.broadcast %c7_i32 : i32 to vector<8x1xi32>
    %66 = arith.cmpi sgt, %23, %65 : vector<8x1xi32>
    %67 = vector.broadcast %66 : vector<8x1xi1> to vector<8x64xi1>
    %68 = arith.ori %33, %67 : vector<8x64xi1>
    %69 = arith.select %68, %55, %35 : vector<8x64xi1>, vector<8x64xf32>
    %70 = arith.select %68, %53, %35 : vector<8x64xi1>, vector<8x64xf32>
    %c8 = arith.constant 8 : index
    %c0_21 = arith.constant 0 : index
    %71 = vector.load %arg19[%c8, %c0_21] : memref<64x256xf32, #tpu.memory_space<vmem>>, vector<8x256xf32>
    %72 = arith.truncf %69 : vector<8x64xf32> to vector<8x64xbf16>
    %cst_22 = arith.constant dense<0.000000e+00> : vector<8x256xf32>
    %73 = tpu.matmul %72, %34, %cst_22 {dimension_numbers = #tpu.dot_dimension_numbers<[1], [0], [0], [1], [0, 0, 1, 1], [], []>} : vector<8x64xbf16>, vector<64x256xbf16>, vector<8x256xf32> -> vector<8x256xf32>
    %74 = arith.addf %71, %73 : vector<8x256xf32>
    %75 = vector.extract_strided_slice %74 {offsets = [0, 0], sizes = [8, 192], strides = [1, 1]} : vector<8x256xf32> to vector<8x192xf32>
    %76 = arith.negf %75 : vector<8x192xf32>
    %77 = math.exp %76 : vector<8x192xf32>
    %cst_23 = arith.constant 1.000000e+00 : f32
    %78 = vector.broadcast %cst_23 : f32 to vector<8x192xf32>
    %79 = arith.addf %78, %77 : vector<8x192xf32>
    %80 = arith.divf %78, %79 : vector<8x192xf32>
    %81 = vector.extract_strided_slice %74 {offsets = [0, 192], sizes = [8, 64], strides = [1, 1]} : vector<8x256xf32> to vector<8x64xf32>
    %82 = math.tanh %81 : vector<8x64xf32>
    %83 = vector.extract_strided_slice %80 {offsets = [0, 0], sizes = [8, 64], strides = [1, 1]} : vector<8x192xf32> to vector<8x64xf32>
    %84 = vector.extract_strided_slice %80 {offsets = [0, 64], sizes = [8, 64], strides = [1, 1]} : vector<8x192xf32> to vector<8x64xf32>
    %85 = vector.extract_strided_slice %80 {offsets = [0, 128], sizes = [8, 64], strides = [1, 1]} : vector<8x192xf32> to vector<8x64xf32>
    %86 = arith.mulf %84, %70 : vector<8x64xf32>
    %87 = arith.mulf %83, %82 : vector<8x64xf32>
    %88 = arith.addf %86, %87 : vector<8x64xf32>
    %89 = math.tanh %88 : vector<8x64xf32>
    %90 = arith.mulf %85, %89 : vector<8x64xf32>
    %91 = vector.extract_strided_slice %30 {offsets = [0, 1], sizes = [8, 1], strides = [1, 1]} : vector<8x8xf32> to vector<8x1xf32>
    %92 = vector.extract_strided_slice %30 {offsets = [0, 6], sizes = [8, 1], strides = [1, 1]} : vector<8x8xf32> to vector<8x1xf32>
    %93 = vector.shape_cast %91 : vector<8x1xf32> to vector<8x1xf32>
    %94 = vector.broadcast %93 : vector<8x1xf32> to vector<8x64xf32>
    %95 = vector.shape_cast %92 : vector<8x1xf32> to vector<8x1xf32>
    %96 = vector.broadcast %95 : vector<8x1xf32> to vector<8x64xf32>
    %97 = arith.select %33, %94, %96 : vector<8x64xi1>, vector<8x64xf32>
    %98 = arith.mulf %90, %97 : vector<8x64xf32>
    %99 = arith.addf %64, %98 : vector<8x64xf32>
    %c6_i32 = arith.constant 6 : i32
    %100 = vector.broadcast %c6_i32 : i32 to vector<8x1xi32>
    %101 = arith.cmpi sgt, %23, %100 : vector<8x1xi32>
    %102 = vector.broadcast %101 : vector<8x1xi1> to vector<8x64xi1>
    %103 = arith.ori %33, %102 : vector<8x64xi1>
    %104 = arith.select %103, %90, %69 : vector<8x64xi1>, vector<8x64xf32>
    %105 = arith.select %103, %88, %70 : vector<8x64xi1>, vector<8x64xf32>
    %c16 = arith.constant 16 : index
    %c0_24 = arith.constant 0 : index
    %106 = vector.load %arg19[%c16, %c0_24] : memref<64x256xf32, #tpu.memory_space<vmem>>, vector<8x256xf32>
    %107 = arith.truncf %104 : vector<8x64xf32> to vector<8x64xbf16>
    %cst_25 = arith.constant dense<0.000000e+00> : vector<8x256xf32>
    %108 = tpu.matmul %107, %34, %cst_25 {dimension_numbers = #tpu.dot_dimension_numbers<[1], [0], [0], [1], [0, 0, 1, 1], [], []>} : vector<8x64xbf16>, vector<64x256xbf16>, vector<8x256xf32> -> vector<8x256xf32>
    %109 = arith.addf %106, %108 : vector<8x256xf32>
    %110 = vector.extract_strided_slice %109 {offsets = [0, 0], sizes = [8, 192], strides = [1, 1]} : vector<8x256xf32> to vector<8x192xf32>
    %111 = arith.negf %110 : vector<8x192xf32>
    %112 = math.exp %111 : vector<8x192xf32>
    %cst_26 = arith.constant 1.000000e+00 : f32
    %113 = vector.broadcast %cst_26 : f32 to vector<8x192xf32>
    %114 = arith.addf %113, %112 : vector<8x192xf32>
    %115 = arith.divf %113, %114 : vector<8x192xf32>
    %116 = vector.extract_strided_slice %109 {offsets = [0, 192], sizes = [8, 64], strides = [1, 1]} : vector<8x256xf32> to vector<8x64xf32>
    %117 = math.tanh %116 : vector<8x64xf32>
    %118 = vector.extract_strided_slice %115 {offsets = [0, 0], sizes = [8, 64], strides = [1, 1]} : vector<8x192xf32> to vector<8x64xf32>
    %119 = vector.extract_strided_slice %115 {offsets = [0, 64], sizes = [8, 64], strides = [1, 1]} : vector<8x192xf32> to vector<8x64xf32>
    %120 = vector.extract_strided_slice %115 {offsets = [0, 128], sizes = [8, 64], strides = [1, 1]} : vector<8x192xf32> to vector<8x64xf32>
    %121 = arith.mulf %119, %105 : vector<8x64xf32>
    %122 = arith.mulf %118, %117 : vector<8x64xf32>
    %123 = arith.addf %121, %122 : vector<8x64xf32>
    %124 = math.tanh %123 : vector<8x64xf32>
    %125 = arith.mulf %120, %124 : vector<8x64xf32>
    %126 = vector.extract_strided_slice %30 {offsets = [0, 2], sizes = [8, 1], strides = [1, 1]} : vector<8x8xf32> to vector<8x1xf32>
    %127 = vector.extract_strided_slice %30 {offsets = [0, 5], sizes = [8, 1], strides = [1, 1]} : vector<8x8xf32> to vector<8x1xf32>
    %128 = vector.shape_cast %126 : vector<8x1xf32> to vector<8x1xf32>
    %129 = vector.broadcast %128 : vector<8x1xf32> to vector<8x64xf32>
    %130 = vector.shape_cast %127 : vector<8x1xf32> to vector<8x1xf32>
    %131 = vector.broadcast %130 : vector<8x1xf32> to vector<8x64xf32>
    %132 = arith.select %33, %129, %131 : vector<8x64xi1>, vector<8x64xf32>
    %133 = arith.mulf %125, %132 : vector<8x64xf32>
    %134 = arith.addf %99, %133 : vector<8x64xf32>
    %c5_i32 = arith.constant 5 : i32
    %135 = vector.broadcast %c5_i32 : i32 to vector<8x1xi32>
    %136 = arith.cmpi sgt, %23, %135 : vector<8x1xi32>
    %137 = vector.broadcast %136 : vector<8x1xi1> to vector<8x64xi1>
    %138 = arith.ori %33, %137 : vector<8x64xi1>
    %139 = arith.select %138, %125, %104 : vector<8x64xi1>, vector<8x64xf32>
    %140 = arith.select %138, %123, %105 : vector<8x64xi1>, vector<8x64xf32>
    %c24 = arith.constant 24 : index
    %c0_27 = arith.constant 0 : index
    %141 = vector.load %arg19[%c24, %c0_27] : memref<64x256xf32, #tpu.memory_space<vmem>>, vector<8x256xf32>
    %142 = arith.truncf %139 : vector<8x64xf32> to vector<8x64xbf16>
    %cst_28 = arith.constant dense<0.000000e+00> : vector<8x256xf32>
    %143 = tpu.matmul %142, %34, %cst_28 {dimension_numbers = #tpu.dot_dimension_numbers<[1], [0], [0], [1], [0, 0, 1, 1], [], []>} : vector<8x64xbf16>, vector<64x256xbf16>, vector<8x256xf32> -> vector<8x256xf32>
    %144 = arith.addf %141, %143 : vector<8x256xf32>
    %145 = vector.extract_strided_slice %144 {offsets = [0, 0], sizes = [8, 192], strides = [1, 1]} : vector<8x256xf32> to vector<8x192xf32>
    %146 = arith.negf %145 : vector<8x192xf32>
    %147 = math.exp %146 : vector<8x192xf32>
    %cst_29 = arith.constant 1.000000e+00 : f32
    %148 = vector.broadcast %cst_29 : f32 to vector<8x192xf32>
    %149 = arith.addf %148, %147 : vector<8x192xf32>
    %150 = arith.divf %148, %149 : vector<8x192xf32>
    %151 = vector.extract_strided_slice %144 {offsets = [0, 192], sizes = [8, 64], strides = [1, 1]} : vector<8x256xf32> to vector<8x64xf32>
    %152 = math.tanh %151 : vector<8x64xf32>
    %153 = vector.extract_strided_slice %150 {offsets = [0, 0], sizes = [8, 64], strides = [1, 1]} : vector<8x192xf32> to vector<8x64xf32>
    %154 = vector.extract_strided_slice %150 {offsets = [0, 64], sizes = [8, 64], strides = [1, 1]} : vector<8x192xf32> to vector<8x64xf32>
    %155 = vector.extract_strided_slice %150 {offsets = [0, 128], sizes = [8, 64], strides = [1, 1]} : vector<8x192xf32> to vector<8x64xf32>
    %156 = arith.mulf %154, %140 : vector<8x64xf32>
    %157 = arith.mulf %153, %152 : vector<8x64xf32>
    %158 = arith.addf %156, %157 : vector<8x64xf32>
    %159 = math.tanh %158 : vector<8x64xf32>
    %160 = arith.mulf %155, %159 : vector<8x64xf32>
    %161 = vector.extract_strided_slice %30 {offsets = [0, 3], sizes = [8, 1], strides = [1, 1]} : vector<8x8xf32> to vector<8x1xf32>
    %162 = vector.extract_strided_slice %30 {offsets = [0, 4], sizes = [8, 1], strides = [1, 1]} : vector<8x8xf32> to vector<8x1xf32>
    %163 = vector.shape_cast %161 : vector<8x1xf32> to vector<8x1xf32>
    %164 = vector.broadcast %163 : vector<8x1xf32> to vector<8x64xf32>
    %165 = vector.shape_cast %162 : vector<8x1xf32> to vector<8x1xf32>
    %166 = vector.broadcast %165 : vector<8x1xf32> to vector<8x64xf32>
    %167 = arith.select %33, %164, %166 : vector<8x64xi1>, vector<8x64xf32>
    %168 = arith.mulf %160, %167 : vector<8x64xf32>
    %169 = arith.addf %134, %168 : vector<8x64xf32>
    %c4_i32 = arith.constant 4 : i32
    %170 = vector.broadcast %c4_i32 : i32 to vector<8x1xi32>
    %171 = arith.cmpi sgt, %23, %170 : vector<8x1xi32>
    %172 = vector.broadcast %171 : vector<8x1xi1> to vector<8x64xi1>
    %173 = arith.ori %33, %172 : vector<8x64xi1>
    %174 = arith.select %173, %160, %139 : vector<8x64xi1>, vector<8x64xf32>
    %175 = arith.select %173, %158, %140 : vector<8x64xi1>, vector<8x64xf32>
    %c32 = arith.constant 32 : index
    %c0_30 = arith.constant 0 : index
    %176 = vector.load %arg19[%c32, %c0_30] : memref<64x256xf32, #tpu.memory_space<vmem>>, vector<8x256xf32>
    %177 = arith.truncf %174 : vector<8x64xf32> to vector<8x64xbf16>
    %cst_31 = arith.constant dense<0.000000e+00> : vector<8x256xf32>
    %178 = tpu.matmul %177, %34, %cst_31 {dimension_numbers = #tpu.dot_dimension_numbers<[1], [0], [0], [1], [0, 0, 1, 1], [], []>} : vector<8x64xbf16>, vector<64x256xbf16>, vector<8x256xf32> -> vector<8x256xf32>
    %179 = arith.addf %176, %178 : vector<8x256xf32>
    %180 = vector.extract_strided_slice %179 {offsets = [0, 0], sizes = [8, 192], strides = [1, 1]} : vector<8x256xf32> to vector<8x192xf32>
    %181 = arith.negf %180 : vector<8x192xf32>
    %182 = math.exp %181 : vector<8x192xf32>
    %cst_32 = arith.constant 1.000000e+00 : f32
    %183 = vector.broadcast %cst_32 : f32 to vector<8x192xf32>
    %184 = arith.addf %183, %182 : vector<8x192xf32>
    %185 = arith.divf %183, %184 : vector<8x192xf32>
    %186 = vector.extract_strided_slice %179 {offsets = [0, 192], sizes = [8, 64], strides = [1, 1]} : vector<8x256xf32> to vector<8x64xf32>
    %187 = math.tanh %186 : vector<8x64xf32>
    %188 = vector.extract_strided_slice %185 {offsets = [0, 0], sizes = [8, 64], strides = [1, 1]} : vector<8x192xf32> to vector<8x64xf32>
    %189 = vector.extract_strided_slice %185 {offsets = [0, 64], sizes = [8, 64], strides = [1, 1]} : vector<8x192xf32> to vector<8x64xf32>
    %190 = vector.extract_strided_slice %185 {offsets = [0, 128], sizes = [8, 64], strides = [1, 1]} : vector<8x192xf32> to vector<8x64xf32>
    %191 = arith.mulf %189, %175 : vector<8x64xf32>
    %192 = arith.mulf %188, %187 : vector<8x64xf32>
    %193 = arith.addf %191, %192 : vector<8x64xf32>
    %194 = math.tanh %193 : vector<8x64xf32>
    %195 = arith.mulf %190, %194 : vector<8x64xf32>
    %196 = vector.extract_strided_slice %30 {offsets = [0, 4], sizes = [8, 1], strides = [1, 1]} : vector<8x8xf32> to vector<8x1xf32>
    %197 = vector.extract_strided_slice %30 {offsets = [0, 3], sizes = [8, 1], strides = [1, 1]} : vector<8x8xf32> to vector<8x1xf32>
    %198 = vector.shape_cast %196 : vector<8x1xf32> to vector<8x1xf32>
    %199 = vector.broadcast %198 : vector<8x1xf32> to vector<8x64xf32>
    %200 = vector.shape_cast %197 : vector<8x1xf32> to vector<8x1xf32>
    %201 = vector.broadcast %200 : vector<8x1xf32> to vector<8x64xf32>
    %202 = arith.select %33, %199, %201 : vector<8x64xi1>, vector<8x64xf32>
    %203 = arith.mulf %195, %202 : vector<8x64xf32>
    %204 = arith.addf %169, %203 : vector<8x64xf32>
    %c3_i32 = arith.constant 3 : i32
    %205 = vector.broadcast %c3_i32 : i32 to vector<8x1xi32>
    %206 = arith.cmpi sgt, %23, %205 : vector<8x1xi32>
    %207 = vector.broadcast %206 : vector<8x1xi1> to vector<8x64xi1>
    %208 = arith.ori %33, %207 : vector<8x64xi1>
    %209 = arith.select %208, %195, %174 : vector<8x64xi1>, vector<8x64xf32>
    %210 = arith.select %208, %193, %175 : vector<8x64xi1>, vector<8x64xf32>
    %c40 = arith.constant 40 : index
    %c0_33 = arith.constant 0 : index
    %211 = vector.load %arg19[%c40, %c0_33] : memref<64x256xf32, #tpu.memory_space<vmem>>, vector<8x256xf32>
    %212 = arith.truncf %209 : vector<8x64xf32> to vector<8x64xbf16>
    %cst_34 = arith.constant dense<0.000000e+00> : vector<8x256xf32>
    %213 = tpu.matmul %212, %34, %cst_34 {dimension_numbers = #tpu.dot_dimension_numbers<[1], [0], [0], [1], [0, 0, 1, 1], [], []>} : vector<8x64xbf16>, vector<64x256xbf16>, vector<8x256xf32> -> vector<8x256xf32>
    %214 = arith.addf %211, %213 : vector<8x256xf32>
    %215 = vector.extract_strided_slice %214 {offsets = [0, 0], sizes = [8, 192], strides = [1, 1]} : vector<8x256xf32> to vector<8x192xf32>
    %216 = arith.negf %215 : vector<8x192xf32>
    %217 = math.exp %216 : vector<8x192xf32>
    %cst_35 = arith.constant 1.000000e+00 : f32
    %218 = vector.broadcast %cst_35 : f32 to vector<8x192xf32>
    %219 = arith.addf %218, %217 : vector<8x192xf32>
    %220 = arith.divf %218, %219 : vector<8x192xf32>
    %221 = vector.extract_strided_slice %214 {offsets = [0, 192], sizes = [8, 64], strides = [1, 1]} : vector<8x256xf32> to vector<8x64xf32>
    %222 = math.tanh %221 : vector<8x64xf32>
    %223 = vector.extract_strided_slice %220 {offsets = [0, 0], sizes = [8, 64], strides = [1, 1]} : vector<8x192xf32> to vector<8x64xf32>
    %224 = vector.extract_strided_slice %220 {offsets = [0, 64], sizes = [8, 64], strides = [1, 1]} : vector<8x192xf32> to vector<8x64xf32>
    %225 = vector.extract_strided_slice %220 {offsets = [0, 128], sizes = [8, 64], strides = [1, 1]} : vector<8x192xf32> to vector<8x64xf32>
    %226 = arith.mulf %224, %210 : vector<8x64xf32>
    %227 = arith.mulf %223, %222 : vector<8x64xf32>
    %228 = arith.addf %226, %227 : vector<8x64xf32>
    %229 = math.tanh %228 : vector<8x64xf32>
    %230 = arith.mulf %225, %229 : vector<8x64xf32>
    %231 = vector.extract_strided_slice %30 {offsets = [0, 5], sizes = [8, 1], strides = [1, 1]} : vector<8x8xf32> to vector<8x1xf32>
    %232 = vector.extract_strided_slice %30 {offsets = [0, 2], sizes = [8, 1], strides = [1, 1]} : vector<8x8xf32> to vector<8x1xf32>
    %233 = vector.shape_cast %231 : vector<8x1xf32> to vector<8x1xf32>
    %234 = vector.broadcast %233 : vector<8x1xf32> to vector<8x64xf32>
    %235 = vector.shape_cast %232 : vector<8x1xf32> to vector<8x1xf32>
    %236 = vector.broadcast %235 : vector<8x1xf32> to vector<8x64xf32>
    %237 = arith.select %33, %234, %236 : vector<8x64xi1>, vector<8x64xf32>
    %238 = arith.mulf %230, %237 : vector<8x64xf32>
    %239 = arith.addf %204, %238 : vector<8x64xf32>
    %c2_i32 = arith.constant 2 : i32
    %240 = vector.broadcast %c2_i32 : i32 to vector<8x1xi32>
    %241 = arith.cmpi sgt, %23, %240 : vector<8x1xi32>
    %242 = vector.broadcast %241 : vector<8x1xi1> to vector<8x64xi1>
    %243 = arith.ori %33, %242 : vector<8x64xi1>
    %244 = arith.select %243, %230, %209 : vector<8x64xi1>, vector<8x64xf32>
    %245 = arith.select %243, %228, %210 : vector<8x64xi1>, vector<8x64xf32>
    %c48 = arith.constant 48 : index
    %c0_36 = arith.constant 0 : index
    %246 = vector.load %arg19[%c48, %c0_36] : memref<64x256xf32, #tpu.memory_space<vmem>>, vector<8x256xf32>
    %247 = arith.truncf %244 : vector<8x64xf32> to vector<8x64xbf16>
    %cst_37 = arith.constant dense<0.000000e+00> : vector<8x256xf32>
    %248 = tpu.matmul %247, %34, %cst_37 {dimension_numbers = #tpu.dot_dimension_numbers<[1], [0], [0], [1], [0, 0, 1, 1], [], []>} : vector<8x64xbf16>, vector<64x256xbf16>, vector<8x256xf32> -> vector<8x256xf32>
    %249 = arith.addf %246, %248 : vector<8x256xf32>
    %250 = vector.extract_strided_slice %249 {offsets = [0, 0], sizes = [8, 192], strides = [1, 1]} : vector<8x256xf32> to vector<8x192xf32>
    %251 = arith.negf %250 : vector<8x192xf32>
    %252 = math.exp %251 : vector<8x192xf32>
    %cst_38 = arith.constant 1.000000e+00 : f32
    %253 = vector.broadcast %cst_38 : f32 to vector<8x192xf32>
    %254 = arith.addf %253, %252 : vector<8x192xf32>
    %255 = arith.divf %253, %254 : vector<8x192xf32>
    %256 = vector.extract_strided_slice %249 {offsets = [0, 192], sizes = [8, 64], strides = [1, 1]} : vector<8x256xf32> to vector<8x64xf32>
    %257 = math.tanh %256 : vector<8x64xf32>
    %258 = vector.extract_strided_slice %255 {offsets = [0, 0], sizes = [8, 64], strides = [1, 1]} : vector<8x192xf32> to vector<8x64xf32>
    %259 = vector.extract_strided_slice %255 {offsets = [0, 64], sizes = [8, 64], strides = [1, 1]} : vector<8x192xf32> to vector<8x64xf32>
    %260 = vector.extract_strided_slice %255 {offsets = [0, 128], sizes = [8, 64], strides = [1, 1]} : vector<8x192xf32> to vector<8x64xf32>
    %261 = arith.mulf %259, %245 : vector<8x64xf32>
    %262 = arith.mulf %258, %257 : vector<8x64xf32>
    %263 = arith.addf %261, %262 : vector<8x64xf32>
    %264 = math.tanh %263 : vector<8x64xf32>
    %265 = arith.mulf %260, %264 : vector<8x64xf32>
    %266 = vector.extract_strided_slice %30 {offsets = [0, 6], sizes = [8, 1], strides = [1, 1]} : vector<8x8xf32> to vector<8x1xf32>
    %267 = vector.extract_strided_slice %30 {offsets = [0, 1], sizes = [8, 1], strides = [1, 1]} : vector<8x8xf32> to vector<8x1xf32>
    %268 = vector.shape_cast %266 : vector<8x1xf32> to vector<8x1xf32>
    %269 = vector.broadcast %268 : vector<8x1xf32> to vector<8x64xf32>
    %270 = vector.shape_cast %267 : vector<8x1xf32> to vector<8x1xf32>
    %271 = vector.broadcast %270 : vector<8x1xf32> to vector<8x64xf32>
    %272 = arith.select %33, %269, %271 : vector<8x64xi1>, vector<8x64xf32>
    %273 = arith.mulf %265, %272 : vector<8x64xf32>
    %274 = arith.addf %239, %273 : vector<8x64xf32>
    %c1_i32 = arith.constant 1 : i32
    %275 = vector.broadcast %c1_i32 : i32 to vector<8x1xi32>
    %276 = arith.cmpi sgt, %23, %275 : vector<8x1xi32>
    %277 = vector.broadcast %276 : vector<8x1xi1> to vector<8x64xi1>
    %278 = arith.ori %33, %277 : vector<8x64xi1>
    %279 = arith.select %278, %265, %244 : vector<8x64xi1>, vector<8x64xf32>
    %280 = arith.select %278, %263, %245 : vector<8x64xi1>, vector<8x64xf32>
    %c56 = arith.constant 56 : index
    %c0_39 = arith.constant 0 : index
    %281 = vector.load %arg19[%c56, %c0_39] : memref<64x256xf32, #tpu.memory_space<vmem>>, vector<8x256xf32>
    %282 = arith.truncf %279 : vector<8x64xf32> to vector<8x64xbf16>
    %cst_40 = arith.constant dense<0.000000e+00> : vector<8x256xf32>
    %283 = tpu.matmul %282, %34, %cst_40 {dimension_numbers = #tpu.dot_dimension_numbers<[1], [0], [0], [1], [0, 0, 1, 1], [], []>} : vector<8x64xbf16>, vector<64x256xbf16>, vector<8x256xf32> -> vector<8x256xf32>
    %284 = arith.addf %281, %283 : vector<8x256xf32>
    %285 = vector.extract_strided_slice %284 {offsets = [0, 0], sizes = [8, 192], strides = [1, 1]} : vector<8x256xf32> to vector<8x192xf32>
    %286 = arith.negf %285 : vector<8x192xf32>
    %287 = math.exp %286 : vector<8x192xf32>
    %cst_41 = arith.constant 1.000000e+00 : f32
    %288 = vector.broadcast %cst_41 : f32 to vector<8x192xf32>
    %289 = arith.addf %288, %287 : vector<8x192xf32>
    %290 = arith.divf %288, %289 : vector<8x192xf32>
    %291 = vector.extract_strided_slice %284 {offsets = [0, 192], sizes = [8, 64], strides = [1, 1]} : vector<8x256xf32> to vector<8x64xf32>
    %292 = math.tanh %291 : vector<8x64xf32>
    %293 = vector.extract_strided_slice %290 {offsets = [0, 0], sizes = [8, 64], strides = [1, 1]} : vector<8x192xf32> to vector<8x64xf32>
    %294 = vector.extract_strided_slice %290 {offsets = [0, 64], sizes = [8, 64], strides = [1, 1]} : vector<8x192xf32> to vector<8x64xf32>
    %295 = vector.extract_strided_slice %290 {offsets = [0, 128], sizes = [8, 64], strides = [1, 1]} : vector<8x192xf32> to vector<8x64xf32>
    %296 = arith.mulf %294, %280 : vector<8x64xf32>
    %297 = arith.mulf %293, %292 : vector<8x64xf32>
    %298 = arith.addf %296, %297 : vector<8x64xf32>
    %299 = math.tanh %298 : vector<8x64xf32>
    %300 = arith.mulf %295, %299 : vector<8x64xf32>
    %301 = vector.extract_strided_slice %30 {offsets = [0, 7], sizes = [8, 1], strides = [1, 1]} : vector<8x8xf32> to vector<8x1xf32>
    %302 = vector.extract_strided_slice %30 {offsets = [0, 0], sizes = [8, 1], strides = [1, 1]} : vector<8x8xf32> to vector<8x1xf32>
    %303 = vector.shape_cast %301 : vector<8x1xf32> to vector<8x1xf32>
    %304 = vector.broadcast %303 : vector<8x1xf32> to vector<8x64xf32>
    %305 = vector.shape_cast %302 : vector<8x1xf32> to vector<8x1xf32>
    %306 = vector.broadcast %305 : vector<8x1xf32> to vector<8x64xf32>
    %307 = arith.select %33, %304, %306 : vector<8x64xi1>, vector<8x64xf32>
    %308 = arith.mulf %300, %307 : vector<8x64xf32>
    %309 = arith.addf %274, %308 : vector<8x64xf32>
    %310 = arith.truncf %309 : vector<8x64xf32> to vector<8x64xbf16>
    %c0_42 = arith.constant 0 : index
    %c0_43 = arith.constant 0 : index
    %311 = vector.load %arg9[%c0_42, %c0_43] : memref<64x256xbf16, #tpu.memory_space<vmem>>, vector<64x256xbf16>
    %cst_44 = arith.constant dense<0.000000e+00> : vector<8x256xf32>
    %312 = tpu.matmul %310, %311, %cst_44 {dimension_numbers = #tpu.dot_dimension_numbers<[1], [0], [0], [1], [0, 0, 1, 1], [], []>} : vector<8x64xbf16>, vector<64x256xbf16>, vector<8x256xf32> -> vector<8x256xf32>
    %cst_45 = arith.constant 0.000000e+00 : f32
    %313 = vector.broadcast %cst_45 : f32 to vector<8x256xf32>
    %314 = arith.maximumf %312, %313 : vector<8x256xf32>
    %315 = arith.truncf %314 : vector<8x256xf32> to vector<8x256xbf16>
    %c0_46 = arith.constant 0 : index
    %c0_47 = arith.constant 0 : index
    %316 = vector.load %arg10[%c0_46, %c0_47] : memref<256x256xbf16, #tpu.memory_space<vmem>>, vector<256x256xbf16>
    %cst_48 = arith.constant dense<0.000000e+00> : vector<8x256xf32>
    %317 = tpu.matmul %315, %316, %cst_48 {dimension_numbers = #tpu.dot_dimension_numbers<[1], [0], [0], [1], [0, 0, 1, 1], [], []>} : vector<8x256xbf16>, vector<256x256xbf16>, vector<8x256xf32> -> vector<8x256xf32>
    %cst_49 = arith.constant 0.000000e+00 : f32
    %318 = vector.broadcast %cst_49 : f32 to vector<8x256xf32>
    %319 = arith.maximumf %317, %318 : vector<8x256xf32>
    %320 = arith.truncf %319 : vector<8x256xf32> to vector<8x256xbf16>
    %c0_50 = arith.constant 0 : index
    %c0_51 = arith.constant 0 : index
    %321 = vector.load %arg11[%c0_50, %c0_51] : memref<256x64xbf16, #tpu.memory_space<vmem>>, vector<256x64xbf16>
    %cst_52 = arith.constant dense<0.000000e+00> : vector<8x64xf32>
    %322 = tpu.matmul %320, %321, %cst_52 {dimension_numbers = #tpu.dot_dimension_numbers<[1], [0], [0], [1], [0, 0, 1, 1], [], []>} : vector<8x256xbf16>, vector<256x64xbf16>, vector<8x64xf32> -> vector<8x64xf32>
    %c0_53 = arith.constant 0 : index
    %c0_54 = arith.constant 0 : index
    %323 = vector.load %arg12[%c0_53, %c0_54] : memref<1x64xf32, #tpu.memory_space<vmem>>, vector<1x64xf32>
    %324 = vector.broadcast %323 : vector<1x64xf32> to vector<8x64xf32>
    %325 = arith.addf %322, %324 : vector<8x64xf32>
    %c0_55 = arith.constant 0 : index
    %c0_56 = arith.constant 0 : index
    %326 = vector.load %arg1[%c0_55, %c0_56] : memref<8x1xi32, #tpu.memory_space<vmem>>, vector<8x1xi32>
    %327 = tpu.iota {dimensions = array<i32: 1>} : vector<8x128xi32>
    %328 = vector.broadcast %326 : vector<8x1xi32> to vector<8x128xi32>
    %329 = arith.cmpi eq, %328, %327 : vector<8x128xi32>
    %330 = arith.extui %329 : vector<8x128xi1> to vector<8x128xi32>
    %331 = arith.sitofp %330 : vector<8x128xi32> to vector<8x128xf32>
    %332 = arith.truncf %331 : vector<8x128xf32> to vector<8x128xbf16>
    %c0_57 = arith.constant 0 : index
    %c0_58 = arith.constant 0 : index
    %333 = vector.load %arg13[%c0_57, %c0_58] : memref<64x128xbf16, #tpu.memory_space<vmem>>, vector<64x128xbf16>
    %cst_59 = arith.constant dense<0.000000e+00> : vector<8x64xf32>
    %334 = tpu.matmul %332, %333, %cst_59 {dimension_numbers = #tpu.dot_dimension_numbers<[1], [1], [0], [0], [0, 0, 1, 0], [], []>} : vector<8x128xbf16>, vector<64x128xbf16>, vector<8x64xf32> -> vector<8x64xf32>
    %c0_60 = arith.constant 0 : index
    %c0_61 = arith.constant 0 : index
    %335 = vector.load %arg14[%c0_60, %c0_61] : memref<1x64xf32, #tpu.memory_space<vmem>>, vector<1x64xf32>
    %336 = vector.broadcast %335 : vector<1x64xf32> to vector<8x64xf32>
    %337 = arith.mulf %334, %336 : vector<8x64xf32>
    %c0_62 = arith.constant 0 : index
    %c0_63 = arith.constant 0 : index
    %338 = vector.load %arg15[%c0_62, %c0_63] : memref<1x64xf32, #tpu.memory_space<vmem>>, vector<1x64xf32>
    %339 = vector.broadcast %338 : vector<1x64xf32> to vector<8x64xf32>
    %340 = arith.addf %337, %339 : vector<8x64xf32>
    %c32_i32_64 = arith.constant 32 : i32
    %341 = tpu.dynamic_rotate %325 by %c32_i32_64 dim 1 : vector<8x64xf32>, i32 -> vector<8x64xf32>
    %c32_i32_65 = arith.constant 32 : i32
    %342 = tpu.dynamic_rotate %340 by %c32_i32_65 dim 1 : vector<8x64xf32>, i32 -> vector<8x64xf32>
    %343 = tpu.iota {dimensions = array<i32: 1>} : vector<8x64xi32>
    %c32_i32_66 = arith.constant 32 : i32
    %344 = vector.broadcast %c32_i32_66 : i32 to vector<8x64xi32>
    %345 = arith.cmpi slt, %343, %344 : vector<8x64xi32>
    %346 = arith.select %345, %325, %341 : vector<8x64xi1>, vector<8x64xf32>
    %cst_67 = arith.constant 0.000000e+00 : f32
    %347 = vector.broadcast %cst_67 : f32 to vector<8x64xf32>
    %348 = arith.subf %347, %341 : vector<8x64xf32>
    %349 = arith.select %345, %348, %325 : vector<8x64xi1>, vector<8x64xf32>
    %350 = arith.mulf %340, %346 : vector<8x64xf32>
    %351 = arith.mulf %342, %349 : vector<8x64xf32>
    %352 = arith.addf %350, %351 : vector<8x64xf32>
    %c0_68 = arith.constant 0 : index
    %c0_69 = arith.constant 0 : index
    %353 = vector.load %arg16[%c0_68, %c0_69] : memref<1x64xf32, #tpu.memory_space<vmem>>, vector<1x64xf32>
    %354 = vector.broadcast %353 : vector<1x64xf32> to vector<8x64xf32>
    %355 = arith.mulf %352, %354 : vector<8x64xf32>
    %c0_70 = arith.constant 0 : index
    %c0_71 = arith.constant 0 : index
    %356 = vector.load %arg17[%c0_70, %c0_71] : memref<1x64xf32, #tpu.memory_space<vmem>>, vector<1x64xf32>
    %357 = vector.broadcast %356 : vector<1x64xf32> to vector<8x64xf32>
    %358 = arith.addf %355, %357 : vector<8x64xf32>
    %359 = arith.truncf %358 : vector<8x64xf32> to vector<8x64xbf16>
    %c0_72 = arith.constant 0 : index
    %c0_73 = arith.constant 0 : index
    %360 = vector.load %arg13[%c0_72, %c0_73] : memref<64x128xbf16, #tpu.memory_space<vmem>>, vector<64x128xbf16>
    %cst_74 = arith.constant dense<0.000000e+00> : vector<8x128xf32>
    %361 = tpu.matmul %359, %360, %cst_74 {dimension_numbers = #tpu.dot_dimension_numbers<[1], [0], [0], [1], [0, 0, 1, 1], [], []>} : vector<8x64xbf16>, vector<64x128xbf16>, vector<8x128xf32> -> vector<8x128xf32>
    %c0_75 = arith.constant 0 : index
    %c0_76 = arith.constant 0 : index
    %362 = vector.load %arg2[%c0_75, %c0_76] : memref<8x128xf32, #tpu.memory_space<vmem>>, vector<8x128xf32>
    %cst_77 = arith.constant 0.899999976 : f32
    %363 = vector.broadcast %cst_77 : f32 to vector<8x128xf32>
    %364 = arith.mulf %363, %362 : vector<8x128xf32>
    %cst_78 = arith.constant 7.812500e-03 : f32
    %365 = vector.broadcast %cst_78 : f32 to vector<8x128xf32>
    %366 = arith.addf %364, %365 : vector<8x128xf32>
    %cst_79 = arith.constant 0.000000e+00 : f32
    %367 = vector.broadcast %cst_79 : f32 to vector<8x128xf32>
    %368 = arith.maximumf %361, %367 : vector<8x128xf32>
    %369 = math.absf %361 : vector<8x128xf32>
    %cst_80 = arith.constant 0.000000e+00 : f32
    %370 = vector.broadcast %cst_80 : f32 to vector<8x128xf32>
    %371 = arith.subf %370, %369 : vector<8x128xf32>
    %372 = math.exp %371 : vector<8x128xf32>
    %373 = math.log1p %372 : vector<8x128xf32>
    %374 = arith.addf %368, %373 : vector<8x128xf32>
    %375 = arith.mulf %366, %361 : vector<8x128xf32>
    %376 = arith.subf %374, %375 : vector<8x128xf32>
    %377 = tpu.iota {dimensions = array<i32: 0>} : vector<8x128xi32>
    %c2_i32_81 = arith.constant 2 : i32
    %378 = vector.broadcast %c2_i32_81 : i32 to vector<8x128xi32>
    %379 = arith.cmpi slt, %377, %378 : vector<8x128xi32>
    %380 = arith.extui %379 : vector<8x128xi1> to vector<8x128xi32>
    %381 = arith.sitofp %380 : vector<8x128xi32> to vector<8x128xf32>
    %382 = arith.mulf %376, %381 : vector<8x128xf32>
    %383 = vector.shape_cast %382 : vector<8x128xf32> to vector<1x8x128xf32>
    %cst_82 = arith.constant dense<0.000000e+00> : vector<1xf32>
    %384 = vector.multi_reduction <add>, %383, %cst_82 [1, 2] : vector<1x8x128xf32> to vector<1xf32>
    %385 = vector.shape_cast %384 : vector<1xf32> to vector<1x1x1xf32>
    %386 = vector.extract %385[0, 0, 0] : f32 from vector<1x1x1xf32>
    %c0_83 = arith.constant 0 : index
    %c0_84 = arith.constant 0 : index
    %387 = memref.load %arg18[%c0_83, %c0_84] : memref<1x1xf32, #tpu.memory_space<smem>>
    memref.store %386, %arg18[%c0_83, %c0_84] : memref<1x1xf32, #tpu.memory_space<smem>>
    return
  }
}

</mosaic_0001>

<bundles_post_ra>
// kernel: relation_extractor_forward.1
= control target key start
LH: loop header
LB: loop body
LE: loop exit
PB: predicated region body
PF: predicated region fallthrough
CT: control target
= control target key end

     0   :  { %s3428_s0 = inlined_call_operand.vmem [shape: s32[64,2], index: 0, kind: input, shape index: {}]   ;;  %s3429_s1 = inlined_call_operand.vmem [shape: s32[8,1], index: 1, kind: input, shape index: {}]   ;;  %s3430_s2 = inlined_call_operand.vmem [shape: f32[8,128], index: 2, kind: input, shape index: {}]   ;;  %s3431_s3 = inlined_call_operand.vmem [shape: s32[8,1], index: 3, kind: input, shape index: {}]   ;;  %s3432_s4 = inlined_call_operand.vmem [shape: f32[8,8], index: 4, kind: input, shape index: {}]   ;;  %s3433_s5 = inlined_call_operand.hbm [shape: bf16[32,256], index: 5, kind: input, shape index: {}]   ;;  %s3434_s6 = inlined_call_operand.hbm [shape: bf16[32,256], index: 6, kind: input, shape index: {}]   ;;  %s3435_s7 = inlined_call_operand.vmem [shape: f32[1,256], index: 7, kind: input, shape index: {}]   ;;  %s3436_s8 = inlined_call_operand.vmem [shape: bf16[64,256], index: 8, kind: input, shape index: {}]   ;;  %s3437_s9 = inlined_call_operand.vmem [shape: bf16[64,256], index: 9, kind: input, shape index: {}]   ;;  %s3438_s10 = inlined_call_operand.vmem [shape: bf16[256,256], index: 10, kind: input, shape index: {}]   ;;  %s3439_s11 = inlined_call_operand.vmem [shape: bf16[256,64], index: 11, kind: input, shape index: {}]   ;;  %s3440_s12 = inlined_call_operand.vmem [shape: f32[1,64], index: 12, kind: input, shape index: {}]   ;;  %s3441_s13 = inlined_call_operand.hbm [shape: bf16[64,128], index: 13, kind: input, shape index: {}]   ;;  %s3442_s14 = inlined_call_operand.vmem [shape: f32[1,64], index: 14, kind: input, shape index: {}]   ;;  %s3443_s15 = inlined_call_operand.vmem [shape: f32[1,64], index: 15, kind: input, shape index: {}]   ;;  %s3444_s16 = inlined_call_operand.vmem [shape: f32[1,64], index: 16, kind: input, shape index: {}]   ;;  %s3445_s17 = inlined_call_operand.vmem [shape: f32[1,64], index: 17, kind: input, shape index: {}]   ;;  %s3446_s18 = inlined_call_operand.hbm [shape: f32[1,1], index: 18, kind: output, shape index: {}]  }
   0x1   :  { %3448 = sst [smem:[#allocation13_spill]] %s3428_s0 }
   0x2   :  { %3449 = sst [smem:[#allocation14_spill]] %s3429_s1 }
   0x3   :  { %3450 = sst [smem:[#allocation15_spill]] %s3430_s2 }
   0x4   :  { %23 = vsyncpa [#allocation4], 0 }
   0x5   :  { %24 = vsyncpa [#allocation7], 0 }
   0x6   :  { %25 = vsyncpa [#allocation5], 0  ;;  %s2602_s27 = smov [#allocation6]   ;;  %s2603_s29 = smov [#allocation3]  }
   0x7   :  { %s53_s28 = sshll.u32 %s2602_s27, 4  ;;  %s41_s30 = sshll.u32 %s2603_s29, 4  ;;  %s54_s28 = int_to_ptr.vmem [resolvable:$true] %s53_s28  ;;  %s42_s30 = int_to_ptr.vmem [resolvable:$true] %s41_s30 }
   0x8   :  { %s2536_s0 = scalar_lea.vmem %s54_s28, 512  ;;  %p2541_p1 = scmp.lt.s32.totalorder %s54_s28, %s54_s28 }
   0x9   :  { %p2537_p0 = scmp.ne.s32.totalorder %s54_s28, %s2536_s0  ;;  %p2542_p2 = scmp.lt.s32.totalorder %s2536_s0, %s2536_s0 }
   0xb   :  { %p2543_p3 = por %p2542_p2, %p2541_p1 }
   0xd   :  { %p2544_p4 = pnand %p2543_p3, %p2537_p0 }
   0xf   :  { %2547 = shalt.err (!%p2544_p4)
}
  0x10   :  { %s2604_s19 = smov 128   ;;  %s2605_s1 = smov 8  }
  0x11   :  { %59 = dma.hbm_to_vmem [thread:$0]  %s3434_s6, 512, %s54_s28, [#allocation7], %s2604_s19, %s2604_s19, %s2605_s1  }
  0x12   :  { %s2556_s22 = scalar_lea.vmem %s42_s30, 512  ;;  %p2561_p6 = scmp.lt.s32.totalorder %s42_s30, %s42_s30 }
  0x13   :  { %p2557_p5 = scmp.ne.s32.totalorder %s42_s30, %s2556_s22  ;;  %p2562_p7 = scmp.lt.s32.totalorder %s2556_s22, %s2556_s22 }
  0x15   :  { %p2563_p8 = por %p2562_p7, %p2561_p6 }
  0x17   :  { %p2564_p9 = pnand %p2563_p8, %p2557_p5 }
  0x19   :  { %2567 = shalt.err (!%p2564_p9)
}
  0x1a   :  { %47 = dma.hbm_to_vmem [thread:$0]  %s3433_s5, 512, %s42_s30, [#allocation4], %s2604_s19, %s2604_s19, %s2605_s1  }
  0x1b   :  { %s2606_s24 = smov [#allocation8]  }
  0x1c   :  { %s77_s25 = sshll.u32 %s2606_s24, 4  ;;  %s78_s25 = int_to_ptr.vmem [resolvable:$true] %s77_s25 }
  0x1d   :  { %s2576_s26 = scalar_lea.vmem %s78_s25, 512  ;;  %p2581_p11 = scmp.lt.s32.totalorder %s78_s25, %s78_s25 }
  0x1e   :  { %p2577_p10 = scmp.ne.s32.totalorder %s78_s25, %s2576_s26  ;;  %p2582_p12 = scmp.lt.s32.totalorder %s2576_s26, %s2576_s26 }
  0x20   :  { %p2583_p13 = por %p2582_p12, %p2581_p11 }
  0x22   :  { %p2584_p0 = pnand %p2583_p13, %p2577_p10 }
  0x24   :  { %2587 = shalt.err (!%p2584_p0)
}
  0x25   :  { %s2607_s6 = smov 64   ;;  %s2608_s27 = smov 4  }
  0x26   :  { %83 = dma.hbm_to_vmem [thread:$0]  %s3441_s13, 512, %s78_s25, [#allocation7], %s2607_s6, %s2607_s6, %s2608_s27  }
  0x27   :  { %2596 = dma.done.wait [#allocation4], 512  }
  0x28   :  { %2597 = vsyncadd [#allocation4], 4294966784 }
  0x29   :  { %2598 = dma.done.wait [#allocation7], 1024  }
  0x2a   :  { %2599 = vsyncadd [#allocation7], 4294966272  ;;  %v2609_v0 = vmov 1   ;;  %v2610_v1 = vmov 0   ;;  %s3451_s0 = sld [smem:[#allocation13_spill]]  ;;  %v110_v19 = vlaneseq  ;;  %v2611_v25 = vmov 0.0  }
  0x2b   :  { %2312 = vset.pattern.permute.xlu1 %v2609_v0  ;;  %2311 = vset.pattern.permute.xlu0 %v2609_v0  ;;  %v2324_v6 = vld [vmem:[#allocation6 + $0x14] ss:$8 sps:$4 sm:$0xff]   ;;  %v2326_v7 = vld [vmem:[#allocation6 + $0x10] ss:$8 sps:$4 sm:$0xff]   ;;  %v2327_v9 = vld [vmem:[#allocation6 + $0x4] ss:$8 sps:$4 sm:$0xff]  }
  0x2c   :  { %289 = vmatprep.mubr.bf16.mxu0 %v2610_v1  ;;  %394 = vmatprep.mubr.bf16.mxu1 %v2610_v1  ;;  %v2329_v11 = vld [vmem:[#allocation6] ss:$8 sps:$4 sm:$0xff]   ;;  %v2764_v12 = vld [vmem:[%s3436_s8 + $0x34] ss:$8 sps:$4 sm:$0xff]   ;;  %v2335_v16 = vld [vmem:[#allocation3 + $0x10] ss:$8 sps:$4 sm:$0xff]  }
  0x2d   :  { %269 = vmatprep.subr.bf16.mxu0 %v2324_v6  ;;  %v2333_v15 = vld [vmem:[#allocation3 + $0x14] ss:$8 sps:$4 sm:$0xff]   ;;  %v2339_v17 = vld [vmem:[#allocation3 + $0x4] ss:$8 sps:$4 sm:$0xff]   ;;  %v2341_v18 = vld [vmem:[#allocation3] ss:$8 sps:$4 sm:$0xff]  }
  0x2e   :  { %270 = vmatpush1.bf16.msra.mxu0 %v2326_v7  ;;  %374 = vmatprep.subr.bf16.mxu1 %v2333_v15  ;;  %v2785_v20 = vand.u32 127, %v110_v19  ;;  %vm244_vm2 = vcmask 261120   ;;  %v2794_v28 = vld [vmem:[%s3436_s8 + $0x30] ss:$8 sps:$4 sm:$0xff]   ;;  %v2799_v30 = vld [vmem:[%s3436_s8 + $0x24] ss:$8 sps:$4 sm:$0xff]  }
  0x2f   :  { %271 = vmatprep.subr.bf16.mxu0 %v2327_v9  ;;  %375 = vmatpush1.bf16.msra.mxu1 %v2335_v16  ;;  %v2809_v33 = vld [vmem:[%s3436_s8 + $0x20] ss:$8 sps:$4 sm:$0xff]   ;;  %v2815_v34 = vld [vmem:[%s3436_s8 + $0x14] ss:$8 sps:$4 sm:$0xff]   ;;  %v2823_v39 = vld [vmem:[%s3436_s8 + $0x10] ss:$8 sps:$4 sm:$0xff]  }
  0x30   :  { %v2736_v2 = vld [vmem:[%s3451_s0 + $0x10] sm:$0xff]  ;;  %v102_v3 = vld [vmem:[%s3451_s0] sm:$0xff]  ;;  %v2745_v4 = vld [vmem:[%s3451_s0 + $0x18] sm:$0xff]  ;;  %376 = vmatprep.subr.bf16.mxu1 %v2339_v17  ;;  %s3454_s29 = sld [smem:[#allocation14_spill]]  ;;  %s2622_s26 = smov [#allocation9]  }
  0x31   :  { %171 = vperm.xlu1 %2312, %v2736_v2   ;;  %165 = vperm.xlu0 %2311, %v102_v3   ;;  %v103_v5 = vld [vmem:[%s3451_s0 + $0x8] sm:$0xff]  ;;  %v2759_v10 = vld [vmem:[%s3451_s0 + $0x20] sm:$0xff]  ;;  %v2769_v13 = vld [vmem:[%s3451_s0 + $0x38] sm:$0xff]  ;;  %s3455_s25 = sld [smem:[#allocation15_spill]] }
  0x32   :  { %v2753_v8 = vld [vmem:[%s3451_s0 + $0x28] sm:$0xff]  ;;  %v2774_v14 = vld [vmem:[%s3451_s0 + $0x30] sm:$0xff]  ;;  %272 = vmatpush1.bf16.msra.mxu0 %v2329_v11  ;;  %v2895_v11 = vshrl.u32 %v110_v19, 7 }
  0x33   :  { %551 = vmatprep.subr.bf16.mxu0 %v2764_v12  ;;  %377 = vmatpush1.bf16.msra.mxu1 %v2341_v18  ;;  %v2829_v41 = vld [vmem:[%s3436_s8 + $0x4] ss:$8 sps:$4 sm:$0xff]   ;;  %v2841_v44 = vld [vmem:[%s3436_s8] ss:$8 sps:$4 sm:$0xff]  }
  0x34   :  { %655 = vmatprep.subr.bf16.mxu1 %v2764_v12  ;;  %v439_v17 = vsub.s32 0, %v2895_v11 }
  0x35   :  { %174 = vperm.xlu1 %2312, %v2745_v4   ;;  %168 = vperm.xlu0 %2311, %v103_v5  }
  0x39   :  { %180 = vperm.xlu1 %2312, %v2753_v8   ;;  %177 = vperm.xlu0 %2311, %v2759_v10  }
  0x3d   :  { %186 = vperm.xlu1 %2312, %v2769_v13   ;;  %183 = vperm.xlu0 %2311, %v2774_v14  }
  0x41   :  { %2314 = vset.pattern.permute.xlu1 %v2610_v1  ;;  %2313 = vset.pattern.permute.xlu0 %v2610_v1 }
  0x42   :  { %116 = vperm.xlu1 %2314, %v103_v5   ;;  %113 = vperm.xlu0 %2313, %v102_v3  }
  0xac   :  { %v172_v21 = vpop.permute.xlu1 %171  ;;  %v166_v22 = vpop.permute.xlu0 %165 }
  0xad   :  { %vm188_vm0 = vcmp.eq.s32.totalorder %v166_v22, %v2785_v20  ;;  %vm190_vm3 = vcmp.eq.s32.totalorder %v172_v21, %v2785_v20  ;;  %v435_v21 = vld [vmem:[%s3435_s7] sm:$0x3]  ;;  %v443_v22 = vsub.s32 1, %v2895_v11 }
  0xae   :  { %v2105_v26 = vsel %vm188_vm0, 1.0, %v2611_v25  ;;  %v2107_v35 = vsel %vm190_vm3, 1.0, %v2611_v25 }
  0xb0   :  { %v175_v23 = vpop.permute.xlu1 %174  ;;  %v169_v24 = vpop.permute.xlu0 %168 }
  0xb1   :  { %vm189_vm1 = vcmp.eq.s32.totalorder %v169_v24, %v2785_v20  ;;  %vm191_vm4 = vcmp.eq.s32.totalorder %v175_v23, %v2785_v20  ;;  %v2910_v24 = vrot.slane %v435_v21, %v439_v17 }
  0xb2   :  { %v2106_v27 = vsel %vm189_vm1, 1.0, %v2611_v25  ;;  %v2108_v36 = vsel %vm191_vm4, 1.0, %v2611_v25  ;;  %vm488_vm4 = vcmp.lt.s32.totalorder %v2785_v20, 32 }
  0xb3   :  { %v212_v29 = vpack.c.bf16 %v2106_v27, %v2105_v26  ;;  %v213_v40 = vpack.c.bf16 %v2108_v36, %v2107_v35  ;;  %v2914_v27 = vrot.slane %v435_v21, %v443_v22 }
  0xb4   :  { %v181_v31 = vpop.permute.xlu1 %180  ;;  %v178_v32 = vpop.permute.xlu0 %177 }
  0xb5   :  { %2117 = vmatmul.mubr.msk.bf16.vlgmr.msra.gmra.mxu0 %vm244_vm2, %v212_v29  ;;  %vm193_vm5 = vcmp.eq.s32.totalorder %v181_v31, %v2785_v20  ;;  %vm192_vm6 = vcmp.eq.s32.totalorder %v178_v32, %v2785_v20 }
  0xb6   :  { %552 = vmatpush1.bf16.msra.mxu0 %v2794_v28  ;;  %299 = vmatprep.mubr.bf16.mxu0 %v2610_v1  ;;  %v2110_v47 = vsel %vm193_vm5, 1.0, %v2611_v25  ;;  %v2109_v48 = vsel %vm192_vm6, 1.0, %v2611_v25 }
  0xb7   :  { %553 = vmatprep.subr.bf16.mxu0 %v2799_v30  ;;  %v214_v50 = vpack.c.bf16 %v2110_v47, %v2109_v48 }
  0xb8   :  { %v187_v37 = vpop.permute.xlu1 %186  ;;  %v184_v38 = vpop.permute.xlu0 %183 }
  0xb9   :  { %vm195_vm9 = vcmp.eq.s32.totalorder %v187_v37, %v2785_v20  ;;  %vm194_vm10 = vcmp.eq.s32.totalorder %v184_v38, %v2785_v20 }
  0xba   :  { %554 = vmatpush1.bf16.msra.mxu0 %v2809_v33  ;;  %v2112_v51 = vsel %vm195_vm9, 1.0, %v2611_v25  ;;  %v2111_v52 = vsel %vm194_vm10, 1.0, %v2611_v25 }
  0xbb   :  { %555 = vmatprep.subr.bf16.mxu0 %v2815_v34  ;;  %v215_v53 = vpack.c.bf16 %v2112_v51, %v2111_v52 }
  0xbd   :  { %v117_v42 = vpop.permute.xlu1 %116  ;;  %2118 = vmatmul.mubr.msk.bf16.gmra.mxu0 %vm244_vm2, %v213_v40  ;;  %v114_v43 = vpop.permute.xlu0 %113 }
  0xbe   :  { %vm137_vm7 = vcmp.eq.s32.totalorder %v117_v42, %v2785_v20  ;;  %vm136_vm8 = vcmp.eq.s32.totalorder %v114_v43, %v2785_v20  ;;  %309 = vmatprep.mubr.bf16.mxu0 %v2610_v1  ;;  %556 = vmatpush1.bf16.msra.mxu0 %v2823_v39 }
  0xbf   :  { %v2098_v45 = vsel %vm137_vm7, 1.0, %v2611_v25  ;;  %v2097_v46 = vsel %vm136_vm8, 1.0, %v2611_v25  ;;  %557 = vmatprep.subr.bf16.mxu0 %v2829_v41 }
  0xc0   :  { %v160_v49 = vpack.c.bf16 %v2098_v45, %v2097_v46  ;;  %v2925_v45 = vld [vmem:[%s3431_s3] sm:$0xff] }
  0xc1   :  { %vm628_vm11 = vcmp.gt.s32.totalorder %v2925_v45, 7  ;;  %vm735_vm6 = vcmp.gt.s32.totalorder %v2925_v45, 6  ;;  %vm842_vm9 = vcmp.gt.s32.totalorder %v2925_v45, 5 }
  0xc2   :  { %2125 = vmatmul.mubr.msk.bf16.vlgmr.msra.gmra.mxu1 %vm244_vm2, %v160_v49  ;;  %558 = vmatpush1.bf16.msra.mxu0 %v2841_v44  ;;  %v629_v46 = vsel %vm628_vm11, 1, %v2610_v1 }
  0xc3   :  { %404 = vmatprep.mubr.bf16.mxu1 %v2610_v1  ;;  %656 = vmatpush1.bf16.msra.mxu1 %v2794_v28 }
  0xc4   :  { %657 = vmatprep.subr.bf16.mxu1 %v2799_v30  ;;  %762 = vmatprep.subr.bf16.mxu0 %v2764_v12 }
  0xc5   :  { %2119 = vmatmul.mubr.msk.bf16.gmra.mxu0 %vm244_vm2, %v214_v50 }
  0xc6   :  { %319 = vmatprep.mubr.bf16.mxu0 %v2610_v1 }
  0xc7   :  { %658 = vmatpush1.bf16.msra.mxu1 %v2809_v33 }
  0xc8   :  { %659 = vmatprep.subr.bf16.mxu1 %v2815_v34 }
  0xcb   :  { %660 = vmatpush1.bf16.msra.mxu1 %v2823_v39 }
  0xcc   :  { %661 = vmatprep.subr.bf16.mxu1 %v2829_v41 }
  0xcd   :  { %2120 = vmatmul.mubr.msk.bf16.gmra.mxu0 %vm244_vm2, %v215_v53 }
  0xce   :  { %575 = vmatprep.mubr.bf16.mxu0 %v2610_v1 }
  0xcf   :  { %662 = vmatpush1.bf16.msra.mxu1 %v2841_v44 }
  0xd0   :  { %869 = vmatprep.subr.bf16.mxu1 %v2764_v12 }
  0xd5   :  { %576 = vmatmul.mubr.bf16.vlgmr.msra.gmra.mxu0 %v2610_v1 }
  0xd6   :  { %763 = vmatpush1.bf16.msra.mxu0 %v2794_v28  ;;  %786 = vmatprep.mubr.bf16.mxu0 %v2610_v1 }
  0xd7   :  { %764 = vmatprep.subr.bf16.mxu0 %v2799_v30 }
  0xda   :  { %765 = vmatpush1.bf16.msra.mxu0 %v2809_v33 }
  0xdb   :  { %766 = vmatprep.subr.bf16.mxu0 %v2815_v34 }
  0xde   :  { %767 = vmatpush1.bf16.msra.mxu0 %v2823_v39 }
  0xdf   :  { %768 = vmatprep.subr.bf16.mxu0 %v2829_v41 }
  0xe2   :  { %769 = vmatpush1.bf16.msra.mxu0 %v2841_v44 }
  0xe3   :  { %976 = vmatprep.subr.bf16.mxu0 %v2764_v12 }
 0x175   :  { %v291_v54 = vpop.f32.mrf.mxu0 }
 0x177   :  { %v293_v55 = vpop.f32.mrf.mxu0 }
 0x179   :  { %v295_v56 = vpop.f32.mrf.mxu0 }
 0x17b   :  { %v2878_v57 = vpop.f32.mrf.mxu0 }
 0x17d   :  { %v2880_v58 = vpop.f32.mrf.mxu0 }
 0x17f   :  { %v2882_v59 = vpop.f32.mrf.mxu0 }
 0x181   :  { %v2884_v60 = vpop.f32.mrf.mxu0 }
 0x182   :  { %v396_v61 = vpop.f32.mrf.mxu1 }
 0x183   :  { %v397_v62 = vadd.f32 %v396_v61, %v291_v54  ;;  %v2886_v63 = vpop.f32.mrf.mxu0 }
 0x184   :  { %v398_v3 = vpop.f32.mrf.mxu1 }
 0x185   :  { %v2888_v5 = vpop.f32.mrf.mxu0  ;;  %v399_v26 = vadd.f32 %v398_v3, %v293_v55  ;;  %v447_v31 = vadd.f32 %v2910_v24, %v397_v62 }
 0x186   :  { %v400_v6 = vpop.f32.mrf.mxu1 }
 0x187   :  { %v2890_v7 = vadd.f32 %v400_v6, %v295_v56  ;;  %v2892_v9 = vpop.f32.mrf.mxu0  ;;  %v448_v36 = vadd.f32 %v2914_v27, %v399_v26 }
 0x189   :  { %v2897_v15 = vpop.f32.mrf.mxu0 }
 0x18b   :  { %v2899_v16 = vpop.f32.mrf.mxu0 }
 0x18d   :  { %v2902_v18 = vpop.f32.mrf.mxu0 }
 0x18f   :  { %v2908_v23 = vpop.f32.mrf.mxu0 }
 0x191   :  { %v2912_v19 = vpop.f32.mrf.mxu0 }
 0x193   :  { %v2916_v29 = vpop.f32.mrf.mxu0 }
 0x195   :  { %v577_v32 = vpop.f32.mrf.mxu0 }
 0x196   :  { %v584_v35 = vadd.f32 %v577_v32, %v447_v31 }
 0x197   :  { %v579_v37 = vpop.f32.mrf.mxu0 }
 0x198   :  { %v585_v38 = vadd.f32 %v579_v37, %v448_v36  ;;  %v2138_v47 = vmul.f32 -1.442695, %v584_v35 }
 0x199   :  { %v581_v40 = vpop.f32.mrf.mxu0 }
 0x19a   :  { %2428 = vtanh.f32 %v585_v38  ;;  %v2139_v32 = vmul.f32 -1.442695, %v585_v38  ;;  %v736_v38 = vsel %vm735_vm6, 1, %v2610_v1 }
 0x19b   :  { %v582_v42 = vpop.f32.mrf.mxu0  ;;  %2430 = vpow2.f32 %v2138_v47 }
 0x1a7   :  { %v2429_v43 = vpop.eup %2428 }
 0x1a8   :  { %601 = vrot.lane.b32.xlu1 %v2429_v43, %s2607_s6  ;;  %v2431_v48 = vpop.eup %2430 }
 0x1a9   :  { %v592_v49 = vadd.f32 1.0, %v2431_v48 }
 0x1ab   :  { %2432 = vrcp.f32 %v592_v49 }
 0x1ac   :  { %119 = vperm.xlu1 %2314, %v2736_v2  }
 0x1b0   :  { %125 = vperm.xlu1 %2314, %v2759_v10  }
 0x1b4   :  { %131 = vperm.xlu1 %2314, %v2774_v14  }
 0x1b8   :  { %631 = vperm.xlu1 %2314, %v629_v46   ;;  %v2433_v2 = vpop.eup %2432 }
 0x1b9   :  { %v599_v10 = vmul.f32 0.0, %v2433_v2 }
 0x21a   :  { %v602_v50 = vpop.permute.xlu1 %601 }
 0x21b   :  { %v604_v51 = vmul.f32 %v2433_v2, %v602_v50  ;;  %v402_v2 = vpop.f32.mrf.mxu1 }
 0x21d   :  { %606 = vrot.lane.b32.xlu0 %v604_v51, %s2607_s6 }
 0x221   :  { %122 = vperm.xlu0 %2313, %v2745_v4  }
 0x225   :  { %128 = vperm.xlu0 %2313, %v2753_v8  }
 0x227   :  { %v120_v53 = vpop.permute.xlu1 %119 }
 0x228   :  { %vm138_vm12 = vcmp.eq.s32.totalorder %v120_v53, %v2785_v20 }
 0x229   :  { %134 = vperm.xlu0 %2313, %v2769_v13   ;;  %v2099_v55 = vsel %vm138_vm12, 1.0, %v2611_v25  ;;  %vm949_vm12 = vcmp.gt.s32.totalorder %v2925_v45, 4 }
 0x22b   :  { %v126_v61 = vpop.permute.xlu1 %125 }
 0x22c   :  { %vm140_vm15 = vcmp.eq.s32.totalorder %v126_v61, %v2785_v20  ;;  %v403_v61 = vadd.f32 %v402_v2, %v2878_v57 }
 0x22d   :  { %v2101_v3 = vsel %vm140_vm15, 1.0, %v2611_v25  ;;  %vm1048_vm15 = vcmp.gt.s32.totalorder %v2925_v45, 3 }
 0x22f   :  { %v132_v21 = vpop.permute.xlu1 %131 }
 0x230   :  { %vm142_vm1 = vcmp.eq.s32.totalorder %v132_v21, %v2785_v20 }
 0x231   :  { %v2103_v26 = vsel %vm142_vm1, 1.0, %v2611_v25 }
 0x233   :  { %v632_v36 = vpop.permute.xlu1 %631 }
 0x234   :  { %vm633_vm3 = vcmp.eq.s32.totalorder %v632_v36, 1 }
 0x235   :  { %vm634_vm5 = vmor %vm488_vm4, %vm633_vm3  ;;  %vm1147_vm3 = vcmp.gt.s32.totalorder %v2925_v45, 2 }
 0x28f   :  { %v607_v14 = vpop.permute.xlu0 %606 }
 0x290   :  { %v609_v52 = vadd.f32 %v607_v14, %v599_v10 }
 0x292   :  { %2434 = vtanh.f32 %v609_v52  ;;  %637 = vrot.lane.b32.xlu1 %v609_v52, %s2607_s6 }
 0x293   :  { %2436 = vpow2.f32 %v2139_v32 }
 0x29c   :  { %v123_v54 = vpop.permute.xlu0 %122 }
 0x29d   :  { %vm139_vm13 = vcmp.eq.s32.totalorder %v123_v54, %v2785_v20 }
 0x29e   :  { %v2100_v4 = vsel %vm139_vm13, 1.0, %v2611_v25 }
 0x29f   :  { %v2435_v56 = vpop.eup %2434  ;;  %v161_v8 = vpack.c.bf16 %v2100_v4, %v2099_v55 }
 0x2a0   :  { %v129_v13 = vpop.permute.xlu0 %128  ;;  %612 = vrot.lane.b32.xlu0 %v2435_v56, %s2607_s6  ;;  %v2437_v35 = vpop.eup %2436 }
 0x2a1   :  { %vm141_vm14 = vcmp.eq.s32.totalorder %v129_v13, %v2785_v20  ;;  %2126 = vmatmul.mubr.msk.bf16.gmra.mxu1 %vm244_vm2, %v161_v8  ;;  %v593_v37 = vadd.f32 1.0, %v2437_v35 }
 0x2a2   :  { %414 = vmatprep.mubr.bf16.mxu1 %v2610_v1  ;;  %v2102_v62 = vsel %vm141_vm14, 1.0, %v2611_v25 }
 0x2a3   :  { %v162_v17 = vpack.c.bf16 %v2102_v62, %v2101_v3  ;;  %2438 = vrcp.f32 %v593_v37  ;;  %v449_v62 = vadd.f32 %v2910_v24, %v2890_v7 }
 0x2a4   :  { %v135_v6 = vpop.permute.xlu0 %134 }
 0x2a5   :  { %vm143_vm0 = vcmp.eq.s32.totalorder %v135_v6, %v2785_v20 }
 0x2a6   :  { %v2104_v22 = vsel %vm143_vm0, 1.0, %v2611_v25 }
 0x2a7   :  { %v163_v31 = vpack.c.bf16 %v2104_v22, %v2103_v26 }
 0x2a9   :  { %2127 = vmatmul.mubr.msk.bf16.gmra.mxu1 %vm244_vm2, %v162_v17  ;;  %v450_v17 = vadd.f32 %v2914_v27, %v403_v61 }
 0x2aa   :  { %424 = vmatprep.mubr.bf16.mxu1 %v2610_v1 }
 0x2b0   :  { %v2439_v43 = vpop.eup %2438 }
 0x2b1   :  { %2128 = vmatmul.mubr.msk.bf16.gmra.mxu1 %vm244_vm2, %v163_v31  ;;  %vm539_vm2 = vcmask 523264  }
 0x2b2   :  { %679 = vmatprep.mubr.bf16.mxu1 %v2610_v1 }
 0x304   :  { %v638_v40 = vpop.permute.xlu1 %637 }
 0x305   :  { %v2959_v42 = vsel %vm634_vm5, %v638_v40, 0.0 }
 0x306   :  { %704 = vrot.lane.b32.xlu1 %v2959_v42, %s2607_s6 }
 0x30a   :  { %738 = vperm.xlu1 %2314, %v736_v38  }
 0x312   :  { %v613_v46 = vpop.permute.xlu0 %612 }
 0x313   :  { %v2964_v47 = vmul.f32 %v2439_v43, %v613_v46 }
 0x315   :  { %v2967_v48 = vsel %vm634_vm5, %v2964_v47, 0.0 }
 0x316   :  { %v643_v49 = vpack.c.bf16 %v2967_v48, %v2967_v48 }
 0x318   :  { %2140 = vmatmul.mubr.msk.bf16.vlgmr.msra.gmra.mxu1 %vm539_vm2, %v643_v49 }
 0x319   :  { %870 = vmatpush1.bf16.msra.mxu1 %v2794_v28  ;;  %893 = vmatprep.mubr.bf16.mxu1 %v2610_v1 }
 0x31a   :  { %871 = vmatprep.subr.bf16.mxu1 %v2799_v30 }
 0x31d   :  { %872 = vmatpush1.bf16.msra.mxu1 %v2809_v33 }
 0x31e   :  { %873 = vmatprep.subr.bf16.mxu1 %v2815_v34 }
 0x321   :  { %874 = vmatpush1.bf16.msra.mxu1 %v2823_v39 }
 0x322   :  { %875 = vmatprep.subr.bf16.mxu1 %v2829_v41 }
 0x325   :  { %876 = vmatpush1.bf16.msra.mxu1 %v2841_v44 }
 0x326   :  { %1075 = vmatprep.subr.bf16.mxu1 %v2764_v12 }
 0x361   :  { %v2981_v50 = vpop.f32.mrf.mxu1 }
 0x363   :  { %v2983_v51 = vpop.f32.mrf.mxu1 }
 0x365   :  { %v2985_v10 = vpop.f32.mrf.mxu1 }
 0x367   :  { %v2987_v14 = vpop.f32.mrf.mxu1 }
 0x369   :  { %v2989_v52 = vpop.f32.mrf.mxu1 }
 0x36b   :  { %v2991_v53 = vpop.f32.mrf.mxu1 }
 0x36d   :  { %v2993_v54 = vpop.f32.mrf.mxu1 }
 0x36f   :  { %v2995_v55 = vpop.f32.mrf.mxu1 }
 0x371   :  { %v2997_v4 = vpop.f32.mrf.mxu1 }
 0x373   :  { %v2999_v56 = vpop.f32.mrf.mxu1 }
 0x375   :  { %v3001_v8 = vpop.f32.mrf.mxu1 }
 0x377   :  { %v3004_v13 = vpop.f32.mrf.mxu1 }
 0x378   :  { %v705_v38 = vpop.permute.xlu1 %704 }
 0x3d8   :  { %v681_v3 = vpop.f32.mrf.mxu1 }
 0x3d9   :  { %v688_v6 = vadd.f32 %v681_v3, %v449_v62  ;;  %v739_v3 = vpop.permute.xlu1 %738 }
 0x3da   :  { %v683_v21 = vpop.f32.mrf.mxu1  ;;  %vm740_vm7 = vcmp.eq.s32.totalorder %v739_v3, 1 }
 0x3db   :  { %v689_v22 = vadd.f32 %v683_v21, %v450_v17  ;;  %v2141_v35 = vmul.f32 -1.442695, %v688_v6  ;;  %vm741_vm8 = vmor %vm488_vm4, %vm740_vm7  ;;  %vm1246_vm7 = vcmp.gt.s32.totalorder %v2925_v45, 1 }
 0x3dc   :  { %v685_v26 = vpop.f32.mrf.mxu1 }
 0x3dd   :  { %2440 = vtanh.f32 %v689_v22  ;;  %v2142_v61 = vmul.f32 -1.442695, %v689_v22  ;;  %v843_v26 = vsel %vm842_vm9, 1, %v2610_v1 }
 0x3de   :  { %v686_v31 = vpop.f32.mrf.mxu1  ;;  %2442 = vpow2.f32 %v2141_v35 }
 0x3ea   :  { %v2441_v32 = vpop.eup %2440 }
 0x3eb   :  { %709 = vrot.lane.b32.xlu0 %v2441_v32, %s2607_s6  ;;  %v2443_v57 = vpop.eup %2442 }
 0x3ec   :  { %v696_v36 = vadd.f32 1.0, %v2443_v57 }
 0x3ee   :  { %2444 = vrcp.f32 %v696_v36 }
 0x3fb   :  { %v2445_v37 = vpop.eup %2444 }
 0x3fc   :  { %v707_v43 = vmul.f32 %v2445_v37, %v705_v38 }
 0x45d   :  { %v710_v40 = vpop.permute.xlu0 %709 }
 0x45e   :  { %v712_v7 = vmul.f32 %v2445_v37, %v710_v40 }
 0x460   :  { %714 = vrot.lane.b32.xlu0 %v712_v7, %s2607_s6 }
 0x4d2   :  { %v715_v46 = vpop.permute.xlu0 %714 }
 0x4d3   :  { %v717_v49 = vadd.f32 %v715_v46, %v707_v43 }
 0x4d5   :  { %2446 = vtanh.f32 %v717_v49  ;;  %744 = vrot.lane.b32.xlu1 %v717_v49, %s2607_s6 }
 0x4d6   :  { %2448 = vpow2.f32 %v2142_v61 }
 0x4e2   :  { %v2447_v2 = vpop.eup %2446 }
 0x4e3   :  { %720 = vrot.lane.b32.xlu0 %v2447_v2, %s2607_s6  ;;  %v2449_v62 = vpop.eup %2448 }
 0x4e4   :  { %v697_v6 = vadd.f32 1.0, %v2449_v62 }
 0x4e6   :  { %2450 = vrcp.f32 %v697_v6 }
 0x4f3   :  { %v2451_v22 = vpop.eup %2450 }
 0x547   :  { %v745_v17 = vpop.permute.xlu1 %744 }
 0x548   :  { %v747_v21 = vsel %vm741_vm8, %v745_v17, %v2959_v42  ;;  %v407_v42 = vadd.f32 %v2981_v50, %v2880_v58 }
 0x549   :  { %811 = vrot.lane.b32.xlu1 %v747_v21, %s2607_s6 }
 0x54a   :  { %v451_v36 = vadd.f32 %v2910_v24, %v407_v42 }
 0x54d   :  { %845 = vperm.xlu1 %2314, %v843_v26  }
 0x555   :  { %v721_v31 = vpop.permute.xlu0 %720 }
 0x556   :  { %v3019_v32 = vmul.f32 %v2451_v22, %v721_v31 }
 0x558   :  { %v742_v35 = vsel %vm741_vm8, %v3019_v32, %v2967_v48  ;;  %v409_v48 = vadd.f32 %v2983_v51, %v2882_v59 }
 0x559   :  { %v750_v57 = vpack.c.bf16 %v742_v35, %v742_v35 }
 0x55a   :  { %v452_v7 = vadd.f32 %v2914_v27, %v409_v48 }
 0x55b   :  { %2143 = vmatmul.mubr.msk.bf16.vlgmr.msra.gmra.mxu0 %vm539_vm2, %v750_v57 }
 0x55c   :  { %977 = vmatpush1.bf16.msra.mxu0 %v2794_v28  ;;  %1000 = vmatprep.mubr.bf16.mxu0 %v2610_v1 }
 0x55d   :  { %978 = vmatprep.subr.bf16.mxu0 %v2799_v30 }
 0x560   :  { %979 = vmatpush1.bf16.msra.mxu0 %v2809_v33 }
 0x561   :  { %980 = vmatprep.subr.bf16.mxu0 %v2815_v34 }
 0x564   :  { %981 = vmatpush1.bf16.msra.mxu0 %v2823_v39 }
 0x565   :  { %982 = vmatprep.subr.bf16.mxu0 %v2829_v41 }
 0x568   :  { %983 = vmatpush1.bf16.msra.mxu0 %v2841_v44 }
 0x569   :  { %1174 = vmatprep.subr.bf16.mxu0 %v2764_v12 }
 0x5bb   :  { %v812_v3 = vpop.permute.xlu1 %811 }
 0x5c8   :  { %v846_v42 = vpop.permute.xlu1 %845 }
 0x5c9   :  { %vm847_vm10 = vcmp.eq.s32.totalorder %v846_v42, 1 }
 0x5ca   :  { %vm848_vm11 = vmor %vm488_vm4, %vm847_vm10 }
 0x61b   :  { %v788_v37 = vpop.f32.mrf.mxu0 }
 0x61c   :  { %v795_v40 = vadd.f32 %v788_v37, %v451_v36 }
 0x61d   :  { %v790_v38 = vpop.f32.mrf.mxu0 }
 0x61e   :  { %v796_v43 = vadd.f32 %v790_v38, %v452_v7  ;;  %v2144_v61 = vmul.f32 -1.442695, %v795_v40  ;;  %v950_v40 = vsel %vm949_vm12, 1, %v2610_v1 }
 0x61f   :  { %v792_v46 = vpop.f32.mrf.mxu0 }
 0x620   :  { %2452 = vtanh.f32 %v796_v43  ;;  %v2145_v31 = vmul.f32 -1.442695, %v796_v43 }
 0x621   :  { %v793_v49 = vpop.f32.mrf.mxu0  ;;  %2454 = vpow2.f32 %v2144_v61 }
 0x62d   :  { %v2453_v2 = vpop.eup %2452 }
 0x62e   :  { %816 = vrot.lane.b32.xlu0 %v2453_v2, %s2607_s6  ;;  %v2455_v58 = vpop.eup %2454 }
 0x62f   :  { %v803_v50 = vadd.f32 1.0, %v2455_v58 }
 0x631   :  { %2456 = vrcp.f32 %v803_v50 }
 0x63e   :  { %v2457_v59 = vpop.eup %2456 }
 0x63f   :  { %v814_v6 = vmul.f32 %v2457_v59, %v812_v3 }
 0x6a0   :  { %v817_v51 = vpop.permute.xlu0 %816 }
 0x6a1   :  { %v819_v62 = vmul.f32 %v2457_v59, %v817_v51 }
 0x6a3   :  { %821 = vrot.lane.b32.xlu0 %v819_v62, %s2607_s6 }
 0x715   :  { %v822_v17 = vpop.permute.xlu0 %821 }
 0x716   :  { %v824_v26 = vadd.f32 %v822_v17, %v814_v6 }
 0x718   :  { %2458 = vtanh.f32 %v824_v26  ;;  %851 = vrot.lane.b32.xlu1 %v824_v26, %s2607_s6 }
 0x719   :  { %2460 = vpow2.f32 %v2145_v31 }
 0x725   :  { %v2459_v22 = vpop.eup %2458 }
 0x726   :  { %827 = vrot.lane.b32.xlu0 %v2459_v22, %s2607_s6  ;;  %v2461_v57 = vpop.eup %2460 }
 0x727   :  { %v804_v48 = vadd.f32 1.0, %v2461_v57 }
 0x729   :  { %2462 = vrcp.f32 %v804_v48 }
 0x736   :  { %v2463_v7 = vpop.eup %2462 }
 0x78a   :  { %v852_v36 = vpop.permute.xlu1 %851 }
 0x78b   :  { %v854_v37 = vsel %vm848_vm11, %v852_v36, %v747_v21  ;;  %v411_v21 = vadd.f32 %v2985_v10, %v2884_v60 }
 0x78c   :  { %918 = vrot.lane.b32.xlu1 %v854_v37, %s2607_s6 }
 0x78d   :  { %v453_v2 = vadd.f32 %v2910_v24, %v411_v21  ;;  %v1049_v21 = vsel %vm1048_vm15, 1, %v2610_v1 }
 0x790   :  { %952 = vperm.xlu1 %2314, %v950_v40  }
 0x798   :  { %v828_v38 = vpop.permute.xlu0 %827 }
 0x799   :  { %v3048_v43 = vmul.f32 %v2463_v7, %v828_v38 }
 0x79b   :  { %v849_v46 = vsel %vm848_vm11, %v3048_v43, %v742_v35  ;;  %v413_v35 = vadd.f32 %v2987_v14, %v2886_v63  ;;  %vm2618_vm11 = vmmov 0  }
 0x79c   :  { %v857_v49 = vpack.c.bf16 %v849_v46, %v849_v46 }
 0x79d   :  { %v454_v50 = vadd.f32 %v2914_v27, %v413_v35 }
 0x79e   :  { %2146 = vmatmul.mubr.msk.bf16.vlgmr.msra.gmra.mxu1 %vm539_vm2, %v857_v49 }
 0x79f   :  { %1076 = vmatpush1.bf16.msra.mxu1 %v2794_v28  ;;  %1099 = vmatprep.mubr.bf16.mxu1 %v2610_v1 }
 0x7a0   :  { %1077 = vmatprep.subr.bf16.mxu1 %v2799_v30 }
 0x7a3   :  { %1078 = vmatpush1.bf16.msra.mxu1 %v2809_v33 }
 0x7a4   :  { %1079 = vmatprep.subr.bf16.mxu1 %v2815_v34 }
 0x7a7   :  { %1080 = vmatpush1.bf16.msra.mxu1 %v2823_v39 }
 0x7a8   :  { %1081 = vmatprep.subr.bf16.mxu1 %v2829_v41 }
 0x7ab   :  { %1082 = vmatpush1.bf16.msra.mxu1 %v2841_v44 }
 0x7ac   :  { %1273 = vmatprep.subr.bf16.mxu1 %v2764_v12 }
 0x7fe   :  { %v919_v26 = vpop.permute.xlu1 %918 }
 0x80b   :  { %v953_v40 = vpop.permute.xlu1 %952 }
 0x80c   :  { %vm954_vm13 = vcmp.eq.s32.totalorder %v953_v40, 1 }
 0x80d   :  { %vm955_vm14 = vmor %vm488_vm4, %vm954_vm13 }
 0x85e   :  { %v895_v61 = vpop.f32.mrf.mxu1 }
 0x85f   :  { %v902_v58 = vadd.f32 %v895_v61, %v453_v2 }
 0x860   :  { %v897_v59 = vpop.f32.mrf.mxu1 }
 0x861   :  { %v903_v51 = vadd.f32 %v897_v59, %v454_v50  ;;  %v2147_v12 = vmul.f32 -1.442695, %v902_v58 }
 0x862   :  { %v899_v62 = vpop.f32.mrf.mxu1 }
 0x863   :  { %2464 = vtanh.f32 %v903_v51  ;;  %v2148_v48 = vmul.f32 -1.442695, %v903_v51 }
 0x864   :  { %v900_v3 = vpop.f32.mrf.mxu1  ;;  %2466 = vpow2.f32 %v2147_v12 }
 0x870   :  { %v2465_v6 = vpop.eup %2464 }
 0x871   :  { %923 = vrot.lane.b32.xlu0 %v2465_v6, %s2607_s6  ;;  %v2467_v60 = vpop.eup %2466 }
 0x872   :  { %v910_v10 = vadd.f32 1.0, %v2467_v60 }
 0x874   :  { %2468 = vrcp.f32 %v910_v10 }
 0x881   :  { %v2469_v63 = vpop.eup %2468 }
 0x882   :  { %v921_v22 = vmul.f32 %v2469_v63, %v919_v26 }
 0x8e3   :  { %v924_v14 = vpop.permute.xlu0 %923 }
 0x8e4   :  { %v926_v17 = vmul.f32 %v2469_v63, %v924_v14 }
 0x8e6   :  { %928 = vrot.lane.b32.xlu0 %v926_v17, %s2607_s6 }
 0x958   :  { %v929_v31 = vpop.permute.xlu0 %928 }
 0x959   :  { %v931_v57 = vadd.f32 %v929_v31, %v921_v22 }
 0x95b   :  { %2470 = vtanh.f32 %v931_v57  ;;  %958 = vrot.lane.b32.xlu1 %v931_v57, %s2607_s6 }
 0x95c   :  { %2472 = vpow2.f32 %v2148_v48 }
 0x968   :  { %v2471_v42 = vpop.eup %2470 }
 0x969   :  { %934 = vrot.lane.b32.xlu0 %v2471_v42, %s2607_s6  ;;  %v2473_v36 = vpop.eup %2472 }
 0x96a   :  { %v911_v7 = vadd.f32 1.0, %v2473_v36 }
 0x96c   :  { %2474 = vrcp.f32 %v911_v7 }
 0x979   :  { %v2475_v35 = vpop.eup %2474 }
 0x9cd   :  { %v959_v38 = vpop.permute.xlu1 %958 }
 0x9ce   :  { %v961_v49 = vsel %vm955_vm14, %v959_v38, %v854_v37  ;;  %v417_v37 = vadd.f32 %v2989_v52, %v2888_v5 }
 0x9cf   :  { %1025 = vrot.lane.b32.xlu1 %v961_v49, %s2607_s6 }
 0x9d0   :  { %v455_v59 = vadd.f32 %v2910_v24, %v417_v37 }
 0x9d3   :  { %1051 = vperm.xlu1 %2314, %v1049_v21  }
 0x9db   :  { %v935_v2 = vpop.permute.xlu0 %934 }
 0x9dc   :  { %v3076_v61 = vmul.f32 %v2475_v35, %v935_v2  ;;  %v1148_v35 = vsel %vm1147_vm3, 1, %v2610_v1 }
 0x9de   :  { %v956_v58 = vsel %vm955_vm14, %v3076_v61, %v849_v46  ;;  %v419_v46 = vadd.f32 %v2991_v53, %v2892_v9  ;;  %vm1950_vm14 = vcmask 1048064  }
 0x9df   :  { %v964_v50 = vpack.c.bf16 %v956_v58, %v956_v58 }
 0x9e0   :  { %v456_v3 = vadd.f32 %v2914_v27, %v419_v46 }
 0x9e1   :  { %2149 = vmatmul.mubr.msk.bf16.vlgmr.msra.gmra.mxu0 %vm539_vm2, %v964_v50 }
 0x9e2   :  { %1175 = vmatpush1.bf16.msra.mxu0 %v2794_v28  ;;  %1198 = vmatprep.mubr.bf16.mxu0 %v2610_v1 }
 0x9e3   :  { %1176 = vmatprep.subr.bf16.mxu0 %v2799_v30 }
 0x9e6   :  { %1177 = vmatpush1.bf16.msra.mxu0 %v2809_v33 }
 0x9e7   :  { %1178 = vmatprep.subr.bf16.mxu0 %v2815_v34 }
 0x9ea   :  { %1179 = vmatpush1.bf16.msra.mxu0 %v2823_v39 }
 0x9eb   :  { %1180 = vmatprep.subr.bf16.mxu0 %v2829_v41 }
 0x9ee   :  { %1181 = vmatpush1.bf16.msra.mxu0 %v2841_v44 }
 0xa41   :  { %v1026_v26 = vpop.permute.xlu1 %1025 }
 0xa4e   :  { %v1052_v40 = vpop.permute.xlu1 %1051 }
 0xa4f   :  { %vm1053_vm0 = vcmp.eq.s32.totalorder %v1052_v40, 1  ;;  %v427_v40 = vadd.f32 %v2997_v4, %v2902_v18 }
 0xa50   :  { %vm1054_vm1 = vmor %vm488_vm4, %vm1053_vm0 }
 0xaa1   :  { %v1002_v51 = vpop.f32.mrf.mxu0 }
 0xaa2   :  { %v1009_v62 = vadd.f32 %v1002_v51, %v455_v59 }
 0xaa3   :  { %v1004_v6 = vpop.f32.mrf.mxu0 }
 0xaa4   :  { %v1010_v12 = vadd.f32 %v1004_v6, %v456_v3  ;;  %v2150_v14 = vmul.f32 -1.442695, %v1009_v62 }
 0xaa5   :  { %v1006_v60 = vpop.f32.mrf.mxu0 }
 0xaa6   :  { %2476 = vtanh.f32 %v1010_v12  ;;  %v2151_v48 = vmul.f32 -1.442695, %v1010_v12 }
 0xaa7   :  { %v1007_v10 = vpop.f32.mrf.mxu0  ;;  %2478 = vpow2.f32 %v2150_v14 }
 0xab3   :  { %v2477_v63 = vpop.eup %2476 }
 0xab4   :  { %1030 = vrot.lane.b32.xlu0 %v2477_v63, %s2607_s6  ;;  %v2479_v5 = vpop.eup %2478 }
 0xab5   :  { %v1017_v52 = vadd.f32 1.0, %v2479_v5 }
 0xab7   :  { %2480 = vrcp.f32 %v1017_v52 }
 0xac4   :  { %v2481_v9 = vpop.eup %2480 }
 0xac5   :  { %v1028_v22 = vmul.f32 %v2481_v9, %v1026_v26 }
 0xb26   :  { %v1031_v53 = vpop.permute.xlu0 %1030 }
 0xb27   :  { %v1033_v17 = vmul.f32 %v2481_v9, %v1031_v53 }
 0xb29   :  { %1035 = vrot.lane.b32.xlu0 %v1033_v17, %s2607_s6 }
 0xb9b   :  { %v1036_v31 = vpop.permute.xlu0 %1035 }
 0xb9c   :  { %v1038_v57 = vadd.f32 %v1036_v31, %v1028_v22  ;;  %v1247_v22 = vsel %vm1246_vm7, 1, %v2610_v1 }
 0xb9e   :  { %2482 = vtanh.f32 %v1038_v57  ;;  %1057 = vrot.lane.b32.xlu1 %v1038_v57, %s2607_s6 }
 0xb9f   :  { %2484 = vpow2.f32 %v2151_v48 }
 0xbab   :  { %v2483_v42 = vpop.eup %2482 }
 0xbac   :  { %1041 = vrot.lane.b32.xlu0 %v2483_v42, %s2607_s6  ;;  %v2485_v36 = vpop.eup %2484 }
 0xbad   :  { %v1018_v7 = vadd.f32 1.0, %v2485_v36 }
 0xbaf   :  { %2486 = vrcp.f32 %v1018_v7  ;;  %v429_v7 = vadd.f32 %v2999_v56, %v2908_v23 }
 0xbbc   :  { %v2487_v2 = vpop.eup %2486 }
 0xc10   :  { %v1058_v38 = vpop.permute.xlu1 %1057 }
 0xc11   :  { %v1060_v21 = vsel %vm1054_vm1, %v1058_v38, %v961_v49  ;;  %v421_v49 = vadd.f32 %v2993_v54, %v2897_v15  ;;  %v459_v38 = vadd.f32 %v2910_v24, %v427_v40 }
 0xc12   :  { %1124 = vrot.lane.b32.xlu1 %v1060_v21, %s2607_s6 }
 0xc16   :  { %1150 = vperm.xlu1 %2314, %v1148_v35  }
 0xc1e   :  { %v1042_v50 = vpop.permute.xlu0 %1041 }
 0xc1f   :  { %v3103_v37 = vmul.f32 %v2487_v2, %v1042_v50  ;;  %v460_v2 = vadd.f32 %v2914_v27, %v429_v7 }
 0xc21   :  { %v1055_v46 = vsel %vm1054_vm1, %v3103_v37, %v956_v58  ;;  %v457_v58 = vadd.f32 %v2910_v24, %v421_v49 }
 0xc22   :  { %v1063_v59 = vpack.c.bf16 %v1055_v46, %v1055_v46 }
 0xc24   :  { %2152 = vmatmul.mubr.msk.bf16.vlgmr.msra.gmra.mxu1 %vm539_vm2, %v1063_v59 }
 0xc25   :  { %1274 = vmatpush1.bf16.msra.mxu1 %v2794_v28  ;;  %1297 = vmatprep.mubr.bf16.mxu1 %v2610_v1  ;;  %v423_v28 = vadd.f32 %v2995_v55, %v2899_v16 }
 0xc26   :  { %1275 = vmatprep.subr.bf16.mxu1 %v2799_v30 }
 0xc29   :  { %1276 = vmatpush1.bf16.msra.mxu1 %v2809_v33  ;;  %v458_v33 = vadd.f32 %v2914_v27, %v423_v28 }
 0xc2a   :  { %1277 = vmatprep.subr.bf16.mxu1 %v2815_v34 }
 0xc2d   :  { %1278 = vmatpush1.bf16.msra.mxu1 %v2823_v39 }
 0xc2e   :  { %1279 = vmatprep.subr.bf16.mxu1 %v2829_v41 }
 0xc31   :  { %1280 = vmatpush1.bf16.msra.mxu1 %v2841_v44 }
 0xc84   :  { %v1125_v12 = vpop.permute.xlu1 %1124 }
 0xc91   :  { %v1151_v9 = vpop.permute.xlu1 %1150 }
 0xc92   :  { %vm1152_vm5 = vcmp.eq.s32.totalorder %v1151_v9, 1 }
 0xc93   :  { %vm1153_vm6 = vmor %vm488_vm4, %vm1152_vm5 }
 0xce4   :  { %v1101_v51 = vpop.f32.mrf.mxu1 }
 0xce5   :  { %v1108_v30 = vadd.f32 %v1101_v51, %v457_v58 }
 0xce6   :  { %v1103_v62 = vpop.f32.mrf.mxu1 }
 0xce7   :  { %v1109_v34 = vadd.f32 %v1103_v62, %v458_v33  ;;  %v2153_v44 = vmul.f32 -1.442695, %v1108_v30 }
 0xce8   :  { %v1105_v3 = vpop.f32.mrf.mxu1 }
 0xce9   :  { %2488 = vtanh.f32 %v1109_v34  ;;  %v2154_v5 = vmul.f32 -1.442695, %v1109_v34 }
 0xcea   :  { %v1106_v39 = vpop.f32.mrf.mxu1  ;;  %2490 = vpow2.f32 %v2153_v44 }
 0xcf6   :  { %v2489_v41 = vpop.eup %2488 }
 0xcf7   :  { %1129 = vrot.lane.b32.xlu0 %v2489_v41, %s2607_s6  ;;  %v2491_v15 = vpop.eup %2490 }
 0xcf8   :  { %v1116_v54 = vadd.f32 1.0, %v2491_v15 }
 0xcfa   :  { %2492 = vrcp.f32 %v1116_v54 }
 0xd07   :  { %v2493_v16 = vpop.eup %2492 }
 0xd08   :  { %v1127_v60 = vmul.f32 %v2493_v16, %v1125_v12 }
 0xd69   :  { %v1130_v55 = vpop.permute.xlu0 %1129 }
 0xd6a   :  { %v1132_v6 = vmul.f32 %v2493_v16, %v1130_v55 }
 0xd6c   :  { %1134 = vrot.lane.b32.xlu0 %v1132_v6, %s2607_s6  ;;  %v2372_v6 = vld [vmem:[%s3438_s10 + $0x30] ss:$8 sps:$4 sm:$0xff]  }
 0xdde   :  { %v1135_v10 = vpop.permute.xlu0 %1134 }
 0xddf   :  { %v1137_v63 = vadd.f32 %v1135_v10, %v1127_v60  ;;  %v431_v60 = vadd.f32 %v3001_v8, %v2912_v19  ;;  %v433_v10 = vadd.f32 %v3004_v13, %v2916_v29 }
 0xde1   :  { %2494 = vtanh.f32 %v1137_v63  ;;  %1156 = vrot.lane.b32.xlu1 %v1137_v63, %s2607_s6  ;;  %v461_v63 = vadd.f32 %v2910_v24, %v431_v60  ;;  %v480_v24 = vld [vmem:[%s3432_s4] sm:$0xff]  ;;  %v2380_v60 = vld [vmem:[%s3438_s10 + $0x14] ss:$8 sps:$4 sm:$0xff]  }
 0xde2   :  { %2496 = vpow2.f32 %v2154_v5 }
 0xdee   :  { %v2495_v14 = vpop.eup %2494 }
 0xdef   :  { %1140 = vrot.lane.b32.xlu0 %v2495_v14, %s2607_s6  ;;  %v2497_v52 = vpop.eup %2496 }
 0xdf0   :  { %v1117_v53 = vadd.f32 1.0, %v2497_v52  ;;  %v462_v52 = vadd.f32 %v2914_v27, %v433_v10  ;;  %v2378_v10 = vld [vmem:[%s3438_s10 + $0x10] ss:$8 sps:$4 sm:$0xff]  }
 0xdf2   :  { %2498 = vrcp.f32 %v1117_v53 }
 0xdff   :  { %v2499_v31 = vpop.eup %2498 }
 0xe53   :  { %v1157_v17 = vpop.permute.xlu1 %1156 }
 0xe54   :  { %v3128_v26 = vsel %vm1153_vm6, %v1157_v17, %v1060_v21 }
 0xe55   :  { %1223 = vrot.lane.b32.xlu1 %v3128_v26, %s2607_s6 }
 0xe59   :  { %1249 = vperm.xlu1 %2314, %v1247_v22  }
 0xe61   :  { %v1141_v57 = vpop.permute.xlu0 %1140 }
 0xe62   :  { %v3133_v42 = vmul.f32 %v2499_v31, %v1141_v57  ;;  %v2612_v31 = vmov 7  }
 0xe64   :  { %v1154_v48 = vsel %vm1153_vm6, %v3133_v42, %v1055_v46 }
 0xe65   :  { %v1162_v36 = vpack.c.bf16 %v1154_v48, %v1154_v48 }
 0xe67   :  { %2155 = vmatmul.mubr.msk.bf16.vlgmr.msra.gmra.mxu0 %vm539_vm2, %v1162_v36 }
 0xe68   :  { %1429 = vmatprep.mubr.bf16.mxu0 %v2610_v1 }
 0xec7   :  { %v1224_v30 = vpop.permute.xlu1 %1223 }
 0xed4   :  { %v1250_v15 = vpop.permute.xlu1 %1249 }
 0xed5   :  { %vm1251_vm8 = vcmp.eq.s32.totalorder %v1250_v15, 1  ;;  %v2371_v15 = vld [vmem:[%s3438_s10 + $0x44] ss:$8 sps:$4 sm:$0xff]  }
 0xed6   :  { %vm3153_vm9 = vmor %vm488_vm4, %vm1251_vm8 }
 0xf27   :  { %v1200_v21 = vpop.f32.mrf.mxu0 }
 0xf28   :  { %v1207_v35 = vadd.f32 %v1200_v21, %v459_v38 }
 0xf29   :  { %v1202_v50 = vpop.f32.mrf.mxu0 }
 0xf2a   :  { %v1208_v59 = vadd.f32 %v1202_v50, %v460_v2  ;;  %v2156_v58 = vmul.f32 -1.442695, %v1207_v35  ;;  %v2614_v35 = vmov 6   ;;  %v2616_v2 = vmov 3  }
 0xf2b   :  { %v1204_v46 = vpop.f32.mrf.mxu0  ;;  %v2617_v50 = vmov 4  }
 0xf2c   :  { %2500 = vtanh.f32 %v1208_v59  ;;  %v2157_v39 = vmul.f32 -1.442695, %v1208_v59  ;;  %v2348_v59 = vld [vmem:[%s3437_s9 + $0x30] ss:$8 sps:$4 sm:$0xff]   ;;  %v2350_v46 = vld [vmem:[%s3437_s9 + $0x34] ss:$8 sps:$4 sm:$0xff]  }
 0xf2d   :  { %v1205_v49 = vpop.f32.mrf.mxu0  ;;  %2502 = vpow2.f32 %v2156_v58  ;;  %1405 = vmatprep.subr.bf16.mxu0 %v2350_v46 }
 0xf2e   :  { %v2353_v49 = vld [vmem:[%s3437_s9 + $0x24] ss:$8 sps:$4 sm:$0xff]   ;;  %1406 = vmatpush1.bf16.msra.mxu0 %v2348_v59 }
 0xf2f   :  { %1407 = vmatprep.subr.bf16.mxu0 %v2353_v49 }
 0xf39   :  { %v2501_v28 = vpop.eup %2500 }
 0xf3a   :  { %1228 = vrot.lane.b32.xlu0 %v2501_v28, %s2607_s6  ;;  %v2503_v18 = vpop.eup %2502  ;;  %v2351_v28 = vld [vmem:[%s3437_s9 + $0x20] ss:$8 sps:$4 sm:$0xff]  }
 0xf3b   :  { %v1215_v4 = vadd.f32 1.0, %v2503_v18  ;;  %1408 = vmatpush1.bf16.msra.mxu0 %v2351_v28 }
 0xf3d   :  { %2504 = vrcp.f32 %v1215_v4 }
 0xf4a   :  { %v2505_v23 = vpop.eup %2504 }
 0xf4b   :  { %v1226_v33 = vmul.f32 %v2505_v23, %v1224_v30  ;;  %v2357_v30 = vld [vmem:[%s3437_s9] ss:$8 sps:$4 sm:$0xff]  }
 0xfac   :  { %v1229_v56 = vpop.permute.xlu0 %1228 }
 0xfad   :  { %v1231_v51 = vmul.f32 %v2505_v23, %v1229_v56  ;;  %v2356_v56 = vld [vmem:[%s3437_s9 + $0x14] ss:$8 sps:$4 sm:$0xff]  }
 0xfae   :  { %1409 = vmatprep.subr.bf16.mxu0 %v2356_v56 }
 0xfaf   :  { %1233 = vrot.lane.b32.xlu0 %v1231_v51, %s2607_s6  ;;  %v2359_v51 = vld [vmem:[%s3437_s9 + $0x4] ss:$8 sps:$4 sm:$0xff]  }
0x1021   :  { %v1234_v62 = vpop.permute.xlu0 %1233 }
0x1022   :  { %v1236_v34 = vadd.f32 %v1234_v62, %v1226_v33  ;;  %v2360_v33 = vld [vmem:[%s3438_s10 + $0x70] ss:$8 sps:$4 sm:$0xff]   ;;  %v2362_v62 = vld [vmem:[%s3438_s10 + $0x74] ss:$8 sps:$4 sm:$0xff]  }
0x1023   :  { %1634 = vmatprep.subr.bf16.mxu1 %v2362_v62 }
0x1024   :  { %2506 = vtanh.f32 %v1236_v34  ;;  %1255 = vrot.lane.b32.xlu1 %v1236_v34, %s2607_s6  ;;  %v2365_v34 = vld [vmem:[%s3438_s10 + $0x64] ss:$8 sps:$4 sm:$0xff]  }
0x1025   :  { %2508 = vpow2.f32 %v2157_v39 }
0x1028   :  { %482 = vperm.xlu1 %2314, %v2925_v45  }
0x102c   :  { %2315 = vset.pattern.permute.xlu1 %v2612_v31  ;;  %v2390_v31 = vld [vmem:[%s3438_s10 + $0xd0] ss:$8 sps:$4 sm:$0xff]  }
0x1031   :  { %v2507_v3 = vpop.eup %2506 }
0x1032   :  { %1239 = vrot.lane.b32.xlu0 %v2507_v3, %s2607_s6  ;;  %v2509_v41 = vpop.eup %2508  ;;  %v2363_v3 = vld [vmem:[%s3438_s10 + $0x60] ss:$8 sps:$4 sm:$0xff]  }
0x1033   :  { %v1216_v44 = vadd.f32 1.0, %v2509_v41  ;;  %v2368_v41 = vld [vmem:[%s3438_s10 + $0x54] ss:$8 sps:$4 sm:$0xff]  }
0x1035   :  { %2510 = vrcp.f32 %v1216_v44  ;;  %v2366_v44 = vld [vmem:[%s3438_s10 + $0x50] ss:$8 sps:$4 sm:$0xff]  }
0x1042   :  { %v2511_v54 = vpop.eup %2510 }
0x1096   :  { %v1256_v57 = vpop.permute.xlu1 %1255 }
0x1097   :  { %v1258_v29 = vsel %vm3153_vm9, %v1256_v57, %v3128_v26  ;;  %v2395_v57 = vld [vmem:[%s3438_s10 + $0xc4] ss:$8 sps:$4 sm:$0xff]  }
0x10a3   :  { %v483_v19 = vpop.permute.xlu1 %482 }
0x10a4   :  { %v1240_v16 = vpop.permute.xlu0 %1239  ;;  %vm484_vm10 = vcmp.lt.s32.totalorder %v2785_v20, %v483_v19  ;;  %v2393_v19 = vld [vmem:[%s3438_s10 + $0xc0] ss:$8 sps:$4 sm:$0xff]  }
0x10a5   :  { %v3149_v55 = vmul.f32 %v2511_v54, %v1240_v16  ;;  %v2129_v27 = vsel %vm484_vm10, 1.0, %v2611_v25  ;;  %v2369_v54 = vld [vmem:[%s3438_s10 + $0x40] ss:$8 sps:$4 sm:$0xff]   ;;  %v2374_v16 = vld [vmem:[%s3438_s10 + $0x34] ss:$8 sps:$4 sm:$0xff]  }
0x10a6   :  { %v487_v13 = vmul.f32 %v2129_v27, %v480_v24  ;;  %v2396_v24 = vld [vmem:[%s3438_s10 + $0xb0] ss:$8 sps:$4 sm:$0xff]   ;;  %v2401_v27 = vld [vmem:[%s3438_s10 + $0xa4] ss:$8 sps:$4 sm:$0xff]  }
0x10a7   :  { %v1253_v45 = vsel %vm3153_vm9, %v3149_v55, %v1154_v48  ;;  %v2613_v48 = vmov 5  }
0x10a8   :  { %v1261_v12 = vpack.c.bf16 %v1253_v45, %v1253_v45  ;;  %v2377_v45 = vld [vmem:[%s3438_s10 + $0x24] ss:$8 sps:$4 sm:$0xff]  }
0x10aa   :  { %2158 = vmatmul.mubr.msk.bf16.vlgmr.msra.gmra.mxu1 %vm539_vm2, %v1261_v12  ;;  %v2375_v12 = vld [vmem:[%s3438_s10 + $0x20] ss:$8 sps:$4 sm:$0xff]  }
0x10ab   :  { %1635 = vmatpush1.bf16.msra.mxu1 %v2360_v33 }
0x10ac   :  { %1636 = vmatprep.subr.bf16.mxu1 %v2365_v34 }
0x10af   :  { %1637 = vmatpush1.bf16.msra.mxu1 %v2363_v3 }
0x10b0   :  { %1638 = vmatprep.subr.bf16.mxu1 %v2368_v41 }
0x10b3   :  { %1639 = vmatpush1.bf16.msra.mxu1 %v2366_v44 }
0x10b4   :  { %1640 = vmatprep.subr.bf16.mxu1 %v2371_v15 }
0x10b7   :  { %1641 = vmatpush1.bf16.msra.mxu1 %v2369_v54  ;;  %v2402_v54 = vld [vmem:[%s3438_s10 + $0x90] ss:$8 sps:$4 sm:$0xff]  }
0x10b8   :  { %1642 = vmatprep.subr.bf16.mxu1 %v2374_v16  ;;  %v2405_v16 = vld [vmem:[%s3438_s10 + $0x80] ss:$8 sps:$4 sm:$0xff]  }
0x10bb   :  { %1643 = vmatpush1.bf16.msra.mxu1 %v2372_v6  ;;  %v1854_v6 = vld [vmem:[%s3454_s29] sm:$0xff] }
0x10bc   :  { %1644 = vmatprep.subr.bf16.mxu1 %v2377_v45  ;;  %v2408_v45 = vld [vmem:[%s3439_s11 + $0x78] sm:$0xff]  }
0x10bf   :  { %1645 = vmatpush1.bf16.msra.mxu1 %v2375_v12  ;;  %v2409_v12 = vld [vmem:[%s3439_s11 + $0x38] sm:$0xff]  }
0x10c0   :  { %1646 = vmatprep.subr.bf16.mxu1 %v2380_v60  ;;  %v2410_v60 = vld [vmem:[%s3439_s11 + $0x70] sm:$0xff]  }
0x10c3   :  { %1647 = vmatpush1.bf16.msra.mxu1 %v2378_v10  ;;  %v2411_v10 = vld [vmem:[%s3439_s11 + $0x30] sm:$0xff]  }
0x116a   :  { %v1299_v14 = vpop.f32.mrf.mxu1 }
0x116b   :  { %v1306_v5 = vadd.f32 %v1299_v14, %v461_v63  ;;  %v2383_v63 = vld [vmem:[%s3438_s10 + $0x4] ss:$8 sps:$4 sm:$0xff]   ;;  %v2381_v14 = vld [vmem:[%s3438_s10] ss:$8 sps:$4 sm:$0xff]  }
0x116c   :  { %v1301_v9 = vpop.f32.mrf.mxu1  ;;  %1648 = vmatprep.subr.bf16.mxu1 %v2383_v63  ;;  %v2412_v63 = vld [vmem:[%s3439_s11 + $0x68] sm:$0xff]  }
0x116d   :  { %v3167_v53 = vadd.f32 %v1301_v9, %v462_v52  ;;  %v2159_v36 = vmul.f32 -1.442695, %v1306_v5  ;;  %v2386_v5 = vld [vmem:[%s3438_s10 + $0xf4] ss:$8 sps:$4 sm:$0xff]   ;;  %1649 = vmatpush1.bf16.msra.mxu1 %v2381_v14  ;;  %v2384_v52 = vld [vmem:[%s3438_s10 + $0xf0] ss:$8 sps:$4 sm:$0xff]  }
0x116e   :  { %v1303_v17 = vpop.f32.mrf.mxu1  ;;  %1650 = vmatprep.subr.bf16.mxu1 %v2386_v5  ;;  %v2389_v9 = vld [vmem:[%s3438_s10 + $0xe4] ss:$8 sps:$4 sm:$0xff]  }
0x116f   :  { %2512 = vtanh.f32 %v3167_v53  ;;  %v2387_v17 = vld [vmem:[%s3438_s10 + $0xe0] ss:$8 sps:$4 sm:$0xff]  }
0x1170   :  { %v1304_v22 = vpop.f32.mrf.mxu1  ;;  %2514 = vpow2.f32 %v2159_v36  ;;  %v2413_v14 = vld [vmem:[%s3439_s11 + $0x28] sm:$0xff]   ;;  %v2414_v5 = vld [vmem:[%s3439_s11 + $0x60] sm:$0xff]  }
0x1171   :  { %1651 = vmatpush2.bf16.msra.mxu1 %v2384_v52  ;;  %v2392_v22 = vld [vmem:[%s3438_s10 + $0xd4] ss:$8 sps:$4 sm:$0xff]   ;;  %v2415_v52 = vld [vmem:[%s3439_s11 + $0x20] sm:$0xff]  }
0x1172   :  { %1652 = vmatprep.subr.bf16.mxu1 %v2389_v9  ;;  %v2416_v9 = vld [vmem:[%s3439_s11 + $0x58] sm:$0xff]  }
0x1175   :  { %1653 = vmatpush2.bf16.msra.mxu1 %v2387_v17  ;;  %v2417_v17 = vld [vmem:[%s3439_s11 + $0x18] sm:$0xff]  }
0x1176   :  { %1654 = vmatprep.subr.bf16.mxu1 %v2392_v22  ;;  %v2418_v22 = vld [vmem:[%s3439_s11 + $0x50] sm:$0xff]  }
0x1179   :  { %1655 = vmatpush2.bf16.msra.mxu1 %v2390_v31  ;;  %v2419_v31 = vld [vmem:[%s3439_s11 + $0x10] sm:$0xff]  }
0x117a   :  { %1656 = vmatprep.subr.bf16.mxu1 %v2395_v57  ;;  %v2420_v57 = vld [vmem:[%s3439_s11 + $0x48] sm:$0xff]  }
0x117c   :  { %v2513_v8 = vpop.eup %2512 }
0x117d   :  { %1327 = vrot.lane.b32.xlu0 %v2513_v8, %s2607_s6  ;;  %v2515_v40 = vpop.eup %2514  ;;  %v2398_v8 = vld [vmem:[%s3438_s10 + $0xb4] ss:$8 sps:$4 sm:$0xff]   ;;  %1657 = vmatpush2.bf16.msra.mxu1 %v2393_v19 }
0x117e   :  { %v1314_v7 = vadd.f32 1.0, %v2515_v40  ;;  %1658 = vmatprep.subr.bf16.mxu1 %v2398_v8 }
0x1180   :  { %2516 = vrcp.f32 %v1314_v7 }
0x1181   :  { %1322 = vrot.lane.b32.xlu0 %v1258_v29, %s2607_s6  ;;  %1659 = vmatpush2.bf16.msra.mxu1 %v2396_v24  ;;  %v2399_v29 = vld [vmem:[%s3438_s10 + $0xa0] ss:$8 sps:$4 sm:$0xff]  }
0x1182   :  { %1660 = vmatprep.subr.bf16.mxu1 %v2401_v27 }
0x1185   :  { %618 = vperm.xlu0 %2313, %v487_v13   ;;  %1661 = vmatpush2.bf16.msra.mxu1 %v2399_v29 }
0x1189   :  { %2316 = vset.pattern.permute.xlu0 %v2609_v0  ;;  %v2615_v0 = vmov 2  }
0x118a   :  { %725 = vperm.xlu0 %2316, %v487_v13  }
0x118d   :  { %v2517_v38 = vpop.eup %2516 }
0x118e   :  { %2319 = vset.pattern.permute.xlu0 %v2613_v48  ;;  %v2160_v48 = vmul.f32 -1.442695, %v3167_v53 }
0x118f   :  { %836 = vperm.xlu0 %2319, %v487_v13  }
0x1193   :  { %2323 = vset.pattern.permute.xlu0 %v2610_v1 }
0x11ef   :  { %v1328_v21 = vpop.permute.xlu0 %1327 }
0x11f0   :  { %v1330_v26 = vmul.f32 %v2517_v38, %v1328_v21 }
0x11f2   :  { %1332 = vrot.lane.b32.xlu1 %v1330_v26, %s2607_s6 }
0x11f3   :  { %v1323_v58 = vpop.permute.xlu0 %1322 }
0x11f4   :  { %v1325_v18 = vmul.f32 %v2517_v38, %v1323_v58 }
0x11f6   :  { %622 = vperm.xlu1 %2315, %v487_v13  }
0x11fa   :  { %2317 = vset.pattern.permute.xlu1 %v2614_v35 }
0x11fb   :  { %729 = vperm.xlu1 %2317, %v487_v13  }
0x11ff   :  { %2318 = vset.pattern.permute.xlu1 %v2615_v0 }
0x1200   :  { %832 = vperm.xlu1 %2318, %v487_v13   ;;  %v619_v40 = vpop.permute.xlu0 %618 }
0x1204   :  { %2320 = vset.pattern.permute.xlu1 %v2616_v2 }
0x1205   :  { %939 = vperm.xlu1 %2320, %v487_v13   ;;  %v726_v38 = vpop.permute.xlu0 %725 }
0x1209   :  { %2321 = vset.pattern.permute.xlu1 %v2617_v50 }
0x120a   :  { %943 = vperm.xlu1 %2321, %v487_v13   ;;  %v837_v0 = vpop.permute.xlu0 %836 }
0x120e   :  { %2322 = vset.pattern.permute.xlu1 %v2610_v1  ;;  %v2354_v1 = vld [vmem:[%s3437_s9 + $0x10] ss:$8 sps:$4 sm:$0xff]  }
0x120f   :  { %1410 = vmatpush1.bf16.msra.mxu0 %v2354_v1  ;;  %1856 = vperm.xlu1 %2322, %v1854_v6  }
0x1210   :  { %1411 = vmatprep.subr.bf16.mxu0 %v2359_v51 }
0x1213   :  { %1412 = vmatpush1.bf16.msra.mxu0 %v2357_v30 }
0x1214   :  { %2232 = vmatprep.subr.bf16.mxu0 %v2408_v45 }
0x1264   :  { %v1333_v4 = vpop.permute.xlu1 %1332 }
0x1265   :  { %v1335_v23 = vadd.f32 %v1333_v4, %v1325_v18 }
0x1267   :  { %2518 = vtanh.f32 %v1335_v23 }
0x1268   :  { %2520 = vpow2.f32 %v2160_v48 }
0x1271   :  { %v623_v13 = vpop.permute.xlu1 %622 }
0x1272   :  { %v625_v50 = vsel %vm488_vm4, %v619_v40, %v623_v13 }
0x1273   :  { %v626_v28 = vmul.f32 %v625_v50, %v2964_v47 }
0x1274   :  { %v2519_v39 = vpop.eup %2518 }
0x1275   :  { %1338 = vrot.lane.b32.xlu0 %v2519_v39, %s2607_s6  ;;  %v2521_v26 = vpop.eup %2520  ;;  %v1342_v39 = vsel %vm488_vm4, %v623_v13, %v619_v40  ;;  %v2421_v40 = vld [vmem:[%s3439_s11 + $0x8] sm:$0xff]  }
0x1276   :  { %v730_v36 = vpop.permute.xlu1 %729  ;;  %v1315_v46 = vadd.f32 1.0, %v2521_v26  ;;  %v2425_v26 = vld [vmem:[#allocation8 + $0x10] sm:$0xff]  }
0x1277   :  { %v732_v35 = vsel %vm488_vm4, %v726_v38, %v730_v36  ;;  %v1243_v47 = vsel %vm488_vm4, %v730_v36, %v726_v38  ;;  %v2423_v38 = vld [vmem:[%s3439_s11] sm:$0xff]  }
0x1278   :  { %v733_v53 = vmul.f32 %v732_v35, %v3019_v32  ;;  %2522 = vrcp.f32 %v1315_v46  ;;  %v2426_v35 = vld [vmem:[#allocation8 + $0x8] sm:$0xff]  }
0x127a   :  { %v734_v18 = vadd.f32 %v733_v53, %v626_v28 }
0x127b   :  { %v833_v7 = vpop.permute.xlu1 %832 }
0x127c   :  { %v839_v59 = vsel %vm488_vm4, %v833_v7, %v837_v0  ;;  %v1144_v32 = vsel %vm488_vm4, %v837_v0, %v833_v7  ;;  %v2422_v7 = vld [vmem:[%s3439_s11 + $0x40] sm:$0xff]  }
0x127d   :  { %v840_v58 = vmul.f32 %v839_v59, %v3048_v43  ;;  %v1145_v33 = vmul.f32 %v1144_v32, %v3133_v42  ;;  %v2404_v42 = vld [vmem:[%s3438_s10 + $0x94] ss:$8 sps:$4 sm:$0xff]   ;;  %v2427_v0 = vld [vmem:[#allocation8] sm:$0xff]  }
0x127e   :  { %1662 = vmatprep.subr.bf16.mxu1 %v2404_v42 }
0x127f   :  { %v841_v23 = vadd.f32 %v840_v58, %v734_v18  ;;  %1663 = vmatpush2.bf16.msra.mxu1 %v2402_v54 }
0x1280   :  { %v940_v21 = vpop.permute.xlu1 %939 }
0x1285   :  { %v944_v2 = vpop.permute.xlu1 %943  ;;  %v2523_v62 = vpop.eup %2522 }
0x1286   :  { %v946_v49 = vsel %vm488_vm4, %v940_v21, %v944_v2  ;;  %v1045_v56 = vsel %vm488_vm4, %v944_v2, %v940_v21  ;;  %v2424_v21 = vld [vmem:[#allocation8 + $0x18] sm:$0xff]  }
0x1287   :  { %v947_v4 = vmul.f32 %v946_v49, %v3076_v61  ;;  %v1046_v51 = vmul.f32 %v1045_v56, %v3103_v37  ;;  %v1244_v61 = vmul.f32 %v1243_v47, %v3149_v55  ;;  %v2407_v55 = vld [vmem:[%s3438_s10 + $0x84] ss:$8 sps:$4 sm:$0xff]   ;;  %v2202_v56 = vld [vmem:[%s3440_s12] ss:$0 sm:$0xff]  ;;  %s2620_s12 = smov 96  }
0x1288   :  { %1664 = vmatprep.subr.bf16.mxu1 %v2407_v55  ;;  %v2226_v47 = vld [vmem:[%s3442_s14] ss:$0 sm:$0xff]  ;;  %s2621_s14 = smov 32  }
0x1289   :  { %v948_v1 = vadd.f32 %v947_v4, %v841_v23  ;;  %1665 = vmatpush2.bf16.msra.mxu1 %v2405_v16  ;;  %v2619_v4 = vmov 1.0|1.0  }
0x128a   :  { %2276 = vmatprep.subr.bf16.mxu1 %v2611_v25  ;;  %v1857_v18 = vpop.permute.xlu1 %1856 }
0x128b   :  { %v1047_v30 = vadd.f32 %v1046_v51, %v948_v1  ;;  %vm1858_vm12 = vcmp.eq.s32.totalorder %v1857_v18, %v2785_v20 }
0x128c   :  { %vm2224_vm13 = vmpackc.low %vm1858_vm12, %vm1858_vm12 }
0x128d   :  { %v1146_v43 = vadd.f32 %v1145_v33, %v1047_v30 }
0x128f   :  { %v1245_v41 = vadd.f32 %v1244_v61, %v1146_v43 }
0x12e7   :  { %v1339_v34 = vpop.permute.xlu0 %1338 }
0x12e8   :  { %v1341_v3 = vmul.f32 %v2523_v62, %v1339_v34  ;;  %v2227_v62 = vld [vmem:[%s3443_s15] ss:$0 sm:$0xff] }
0x12ea   :  { %v1343_v37 = vmul.f32 %v1342_v39, %v1341_v3 }
0x12ec   :  { %v1344_v44 = vadd.f32 %v1343_v37, %v1245_v41 }
0x12ee   :  { %v1345_v15 = vpack.c.bf16 %v1344_v44, %v1344_v44 }
0x12f0   :  { %2169 = vmatmul.mubr.msk.bf16.vlgmr.msra.gmra.mxu0 %vm539_vm2, %v1345_v15 }
0x12f1   :  { %2233 = vmatpush3.bf16.msra.mxu0 %v2409_v12 }
0x12f2   :  { %2234 = vmatprep.subr.bf16.mxu0 %v2410_v60 }
0x12f5   :  { %2235 = vmatpush3.bf16.msra.mxu0 %v2411_v10 }
0x12f6   :  { %2236 = vmatprep.subr.bf16.mxu0 %v2412_v63 }
0x12f9   :  { %2237 = vmatpush3.bf16.msra.mxu0 %v2413_v14 }
0x12fa   :  { %2238 = vmatprep.subr.bf16.mxu0 %v2414_v5 }
0x12fd   :  { %2239 = vmatpush3.bf16.msra.mxu0 %v2415_v52 }
0x12fe   :  { %2240 = vmatprep.subr.bf16.mxu0 %v2416_v9  ;;  %v2228_v9 = vld [vmem:[%s3444_s16] ss:$0 sm:$0xff] }
0x1301   :  { %2241 = vmatpush3.bf16.msra.mxu0 %v2417_v17 }
0x1302   :  { %2242 = vmatprep.subr.bf16.mxu0 %v2418_v22 }
0x1305   :  { %2243 = vmatpush3.bf16.msra.mxu0 %v2419_v31  ;;  %v2229_v31 = vld [vmem:[%s3445_s17] ss:$0 sm:$0xff] }
0x1306   :  { %2244 = vmatprep.subr.bf16.mxu0 %v2420_v57 }
0x1309   :  { %2245 = vmatpush3.bf16.msra.mxu0 %v2421_v40 }
0x130a   :  { %2246 = vmatprep.subr.bf16.mxu0 %v2422_v7 }
0x130d   :  { %2247 = vmatpush3.bf16.msra.mxu0 %v2423_v38  ;;  %v2045_v38 = vld [vmem:[%s3455_s25] sm:$0xff] }
0x130e   :  { %2264 = vmatprep.subr.bf16.mxu0 %v2611_v25 }
0x13b0   :  { %v1431_v19 = vpop.f32.mrf.mxu0 }
0x13b1   :  { %v1438_v8 = vmax.f32 %v1431_v19, 0.0 }
0x13b2   :  { %v1433_v24 = vpop.f32.mrf.mxu0 }
0x13b3   :  { %v1439_v27 = vmax.f32 %v1433_v24, 0.0  ;;  %v1440_v48 = vpack.c.bf16 %v1438_v8, %v1438_v8 }
0x13b4   :  { %v1435_v29 = vpop.f32.mrf.mxu0 }
0x13b5   :  { %v1441_v13 = vpack.c.bf16 %v1439_v27, %v1439_v27 }
0x13b6   :  { %v1436_v36 = vpop.f32.mrf.mxu0 }
0x13b7   :  { %1666 = vmatprep.mubr.bf16.mxu1 %v1441_v13 }
0x13b8   :  { %1667 = vmatmul.mubr.bf16.vlgmr.msra.gmra.mxu1 %v1440_v48 }
0x13b9   :  { %2277 = vmatpush3.bf16.msra.mxu1 %v2424_v21  ;;  %2284 = vmatprep.mubr.msk.bf16.mxu1 %vm2618_vm11, %v2611_v25 }
0x13ba   :  { %2278 = vmatprep.subr.bf16.mxu1 %v2611_v25 }
0x13bd   :  { %2279 = vmatpush3.bf16.msra.mxu1 %v2425_v26 }
0x13be   :  { %2280 = vmatprep.subr.bf16.mxu1 %v2611_v25 }
0x13c1   :  { %2281 = vmatpush3.bf16.msra.mxu1 %v2426_v35 }
0x13c2   :  { %2282 = vmatprep.subr.bf16.mxu1 %v2611_v25 }
0x13c5   :  { %2283 = vmatpush3.bf16.msra.mxu1 %v2427_v0 }
0x1478   :  { %v1668_v2 = vpop.f32.mrf.mxu1 }
0x1479   :  { %v1675_v50 = vmax.f32 %v1668_v2, 0.0 }
0x147a   :  { %v1670_v59 = vpop.f32.mrf.mxu1 }
0x147b   :  { %v1676_v46 = vmax.f32 %v1670_v59, 0.0  ;;  %v1677_v28 = vpack.c.bf16 %v1675_v50, %v1675_v50 }
0x147c   :  { %v1672_v53 = vpop.f32.mrf.mxu1 }
0x147d   :  { %v1678_v49 = vpack.c.bf16 %v1676_v46, %v1676_v46 }
0x147e   :  { %v1673_v58 = vpop.f32.mrf.mxu1 }
0x147f   :  { %1846 = vmatprep.mubr.bf16.mxu0 %v1678_v49 }
0x1480   :  { %1847 = vmatmul.mubr.bf16.vlgmr.msra.gmra.mxu0 %v1677_v28 }
0x1481   :  { %2265 = vmatpush3.bf16.xpose.msra.mxu0 %v2424_v21  ;;  %2272 = vmatprep.mubr.msk.bf16.mxu0 %vm2618_vm11, %v2611_v25 }
0x1482   :  { %2266 = vmatprep.subr.bf16.mxu0 %v2611_v25 }
0x1489   :  { %2267 = vmatpush3.bf16.xpose.msra.mxu0 %v2425_v26  ;;  %v2046_v26 = vmul.f32 0.9, %v2045_v38 }
0x148a   :  { %2268 = vmatprep.subr.bf16.mxu0 %v2611_v25 }
0x148b   :  { %v2047_v50 = vadd.f32 0.0078125, %v2046_v26 }
0x1491   :  { %2269 = vmatpush3.bf16.xpose.msra.mxu0 %v2426_v35 }
0x1492   :  { %2270 = vmatprep.subr.bf16.mxu0 %v2611_v25 }
0x1499   :  { %2271 = vmatpush3.bf16.xpose.msra.mxu0 %v2427_v0 }
0x14a0   :  { %2273 = vmatmul.mubr.msk.bf16.vlgmr.msra.gmra.mxu0 %vm2224_vm13, %v2619_v4 }
0x1540   :  { %v2248_v23 = vpop.f32.mrf.mxu0 }
0x1542   :  { %v2249_v1 = vpop.f32.mrf.mxu0 }
0x1543   :  { %v2250_v51 = vadd.f32 %v2249_v1, %v2248_v23 }
0x1544   :  { %v2251_v32 = vpop.f32.mrf.mxu0 }
0x1545   :  { %v1849_v30 = vadd.f32 %v2250_v51, %v2202_v56 }
0x1546   :  { %v2252_v33 = vpop.f32.mrf.mxu0 }
0x1547   :  { %1951 = vrot.lane.b32.xlu0 %v1849_v30, %s2607_s6 }
0x1560   :  { %v1928_v43 = vpop.f32.mrf.mxu0 }
0x1561   :  { %v1941_v34 = vmul.f32 %v2226_v47, %v1928_v43 }
0x1562   :  { %v2274_v61 = vpop.f32.mrf.mxu0 }
0x1563   :  { %v1949_v3 = vadd.f32 %v2227_v62, %v1941_v34 }
0x1564   :  { %v1931_v39 = vpop.f32.mrf.mxu0 }
0x1565   :  { %1957 = vrot.lane.b32.xlu0 %v1949_v3, %s2607_s6 }
0x1566   :  { %v2275_v41 = vpop.f32.mrf.mxu0 }
0x15b9   :  { %v1952_v37 = vpop.permute.xlu0 %1951 }
0x15ba   :  { %v1953_v44 = vsel %vm1950_vm14, %v1952_v37, %v1849_v30 }
0x15bb   :  { %1954 = vrot.lane.b32.xlu1 %v1953_v44, %s2607_s6 }
0x15d7   :  { %v1958_v15 = vpop.permute.xlu0 %1957 }
0x15d8   :  { %v1959_v42 = vsel %vm1950_vm14, %v1958_v15, %v1949_v3 }
0x15d9   :  { %1960 = vrot.lane.b32.xlu0 %v1959_v42, %s2607_s6 }
0x162d   :  { %v1955_v54 = vpop.permute.xlu1 %1954 }
0x162e   :  { %v1956_v55 = vsel %vm1950_vm14, %v1955_v54, %v1849_v30 }
0x162f   :  { %v1968_v16 = vsub.f32 0.0, %v1956_v55  ;;  %1964 = vrot.lane.b32.xlu0 %v1956_v55, %s2620_s12 }
0x1631   :  { %1970 = vrot.lane.b32.xlu1 %v1968_v16, %s2620_s12 }
0x164b   :  { %v1961_v12 = vpop.permute.xlu0 %1960 }
0x164c   :  { %v1962_v10 = vsel %vm1950_vm14, %v1961_v12, %v1949_v3 }
0x16a1   :  { %v1965_v14 = vpop.permute.xlu0 %1964 }
0x16a2   :  { %v1967_v5 = vsel %vm488_vm4, %v1849_v30, %v1965_v14 }
0x16a3   :  { %v1971_v6 = vpop.permute.xlu1 %1970  ;;  %v1974_v52 = vmul.f32 %v1967_v5, %v1949_v3 }
0x16a4   :  { %v1973_v45 = vsel %vm488_vm4, %v1971_v6, %v1849_v30 }
0x16a5   :  { %1976 = vrot.lane.b32.xlu1 %v1973_v45, %s2621_s14 }
0x1717   :  { %v1977_v60 = vpop.permute.xlu1 %1976 }
0x1718   :  { %v1979_v63 = vmul.f32 %v1977_v60, %v1962_v10 }
0x171a   :  { %1981 = vrot.lane.b32.xlu1 %v1979_v63, %s2620_s12 }
0x178c   :  { %v1982_v17 = vpop.permute.xlu1 %1981 }
0x178d   :  { %v1984_v22 = vadd.f32 %v1982_v17, %v1974_v52 }
0x178f   :  { %v1992_v57 = vmul.f32 %v2228_v9, %v1984_v22 }
0x1791   :  { %v2000_v19 = vadd.f32 %v2229_v31, %v1992_v57 }
0x1793   :  { %v2001_v8 = vpack.c.bf16 %v2000_v19, %v2000_v19 }
0x1795   :  { %2285 = vmatmul.mubr.msk.bf16.vlgmr.msra.gmra.mxu1 %vm539_vm2, %v2001_v8  ;;  %vm2067_vm2 = vcmp.lt.s32.totalorder %v2895_v11, 2 }
0x1796   :  { %v2231_v18 = vsel %vm2067_vm2, 1.0, %v2611_v25 }
0x1855   :  { %v2039_v24 = vpop.f32.mrf.mxu1 }
0x1856   :  { %v2049_v27 = vand.u32 2147483647, %v2039_v24  ;;  %v2048_v53 = vmax.f32 %v2039_v24, 0.0  ;;  %v2063_v28 = vmul.f32 %v2047_v50, %v2039_v24 }
0x1857   :  { %v2286_v20 = vpop.f32.mrf.mxu1 }
0x1858   :  { %v2050_v29 = vsub.f32 0.0, %v2049_v27 }
0x1859   :  { %v2042_v13 = vpop.f32.mrf.mxu1 }
0x185a   :  { %v2051_v48 = vmul.f32 1.442695, %v2050_v29 }
0x185b   :  { %v2287_v36 = vpop.f32.mrf.mxu1 }
0x185c   :  { %2524 = vpow2.f32 %v2051_v48 }
0x1869   :  { %v2525_v40 = vpop.eup %2524 }
0x186a   :  { %v2053_v7 = vadd.f32 1.0, %v2525_v40  ;;  %v2056_v21 = vmul.f32 -0.5, %v2525_v40  ;;  %v2059_v0 = vand.u32 2147483647, %v2525_v40 }
0x186c   :  { %2526 = vlog2.f32 %v2053_v7  ;;  %v2057_v35 = vadd.f32 1.0, %v2056_v21  ;;  %vm2060_vm4 = vcmp.lt.f32.partialorder %v2059_v0, 0.0004427343 }
0x186e   :  { %v2058_v46 = vmul.f32 %v2525_v40, %v2057_v35 }
0x1879   :  { %v2527_v2 = vpop.eup %2526 }
0x187a   :  { %v2055_v59 = vmul.f32 0.6931472, %v2527_v2 }
0x187c   :  { %v2061_v49 = vsel %vm2060_vm4, %v2058_v46, %v2055_v59 }
0x187d   :  { %v2062_v58 = vadd.f32 %v2061_v49, %v2048_v53 }
0x187f   :  { %v2064_v4 = vsub.f32 %v2062_v58, %v2063_v28 }
0x1881   :  { %v2070_v23 = vmul.f32 %v2231_v18, %v2064_v4 }
0x1883   :  { %2071 = vadd.xlane.f32.xlu0 %v2070_v23 }
0x190c   :  { %v2072_v56 = vpop.xlane.xlu0 %2071 }
0x190d   :  { %v2073_v1 = vrot.slane %v2072_v56, 4 }
0x190f   :  { %v2074_v51 = vadd.f32 %v2073_v1, %v2072_v56 }
0x1911   :  { %v2075_v32 = vrot.slane %v2074_v51, 2 }
0x1913   :  { %v2076_v30 = vadd.f32 %v2075_v32, %v2074_v51 }
0x1915   :  { %v2077_v33 = vrot.slane %v2076_v30, 1 }
0x1917   :  { %v2078_v47 = vadd.f32 %v2077_v33, %v2076_v30 }
0x1919   :  { %2288 = vpush %v2078_v47 }
0x194a   :  { %s2289_s17 = spop %2288 }
0x194b   :  { %2081 = sst [smem:[#allocation9]] %s2289_s17 }
0x194c   :  { %2089 = dma.smem_to_hbm %s2622_s26, 16, %s3446_s18, [#allocation5]  }
0x194d   :  { %2600 = dma.done.wait [#allocation5], 16  }
0x194e   :  { %2601 = vsyncadd [#allocation5], 4294967280 }
0x194f   :  { %2093 = sfence }
0x1950   :  { %2094 = vsyncpa [#allocation4], 1 }
0x1951   :  { %2095 = vsyncpa [#allocation7], 1 }
0x1952   :  { %2096 = vsyncpa [#allocation5], 1 }

</bundles_post_ra>
